<compile_context>
chip_gen: v5e
topology: v5e:2x2
jax: 0.10.0
libtpu: 0.0.40
codegen_flags: <defaults>
</compile_context>

<pallas_src>
import jax
import jax.numpy as jnp
from jax.experimental import pallas as pl
from jax.experimental.pallas import tpu as pltpu

# Model hyper-parameters (small, consistent with the module's __init__).
SEQ_LEN = 8
LATENT_DIM = 32
E_DIM = 16
NUM_LAYERS = 2
NUM_HEADS = 8            # head split is irrelevant for T==1 attention (see kernel)
FREQ_DIM = 256           # TimestepEmbedder frequency_embedding_size
LN_EPS = 1e-6            # DiT LayerNorm eps (elementwise_affine=False)
MLP_HIDDEN = 4 * LATENT_DIM  # 128

# ---- packed weight slab `w128` (lane width 128) row layout ------------------
W_COLS = 128
R_WT1 = 0                                   # (FREQ_DIM, L)  timestep MLP fc1
R_WT2 = R_WT1 + FREQ_DIM                    # (L, L)         timestep MLP fc2
R_WDD = R_WT2 + LATENT_DIM                  # (L+E, L)       down_dim (contiguous)
R_LAYER0 = R_WDD + LATENT_DIM + E_DIM       # per-layer block start
O_WV, O_WPROJ, O_WFC1, O_WFC2 = 0, LATENT_DIM, 2 * LATENT_DIM, 3 * LATENT_DIM
LAYER_W_ROWS = 3 * LATENT_DIM + MLP_HIDDEN  # wv(32)+wproj(32)+wfc1(32)+wfc2(128)
R_WLAST = R_LAYER0 + NUM_LAYERS * LAYER_W_ROWS   # (L, E padded to 128)
W_ROWS = R_WLAST + LATENT_DIM                    # 816

# ---- packed wide slab `s_wide` (lane width NL*6*L = 384) ---------------------
S_COLS = NUM_LAYERS * 6 * LATENT_DIM        # 384
R_WADA = 0                                  # (L, S_COLS) fused adaLN weights (all layers)
R_BADA = R_WADA + LATENT_DIM                # adaLN bias row
R_BT1 = R_BADA + 1
R_BT2 = R_BT1 + 1
R_BDD = R_BT2 + 1
R_BLAST = R_BDD + 1                         # lanes 0:E_DIM real, rest zero (128-lane store)
R_MISC = R_BLAST + 1                        # lane0 = bsu, lane1 = wal, lane2 = bal
R_BLAYER = R_MISC + 1                       # per layer 4 rows: bv, bproj, bfc1, bfc2
R_WSU = 48                                  # sparse_up_conv weight as a column (8-aligned)
S_ROWS = 56


def _denoiser_kernel(cond_ref, noisy_ref, tfreq_ref, w_ref, s_ref, out_ref):
    f32 = jnp.float32
    L = LATENT_DIM

    # --- tiny conv params from the wide slab ---------------------------------
    wsu = s_ref[pl.ds(R_WSU, SEQ_LEN), :1].reshape(1, SEQ_LEN, 1)   # Conv1d(seq_len,1,1) w
    bsu = s_ref[pl.ds(R_MISC, 1), 0:1]                              # (1,1)
    wal = s_ref[pl.ds(R_MISC, 1), 1:2]                              # align_net scalar affine
    bal = s_ref[pl.ds(R_MISC, 1), 2:3]

    # --- TimestepEmbedder MLP: Linear -> SiLU -> Linear -----------------------
    tf = tfreq_ref[...]                                             # (B, FREQ_DIM)
    h = jnp.dot(tf, w_ref[pl.ds(R_WT1, FREQ_DIM), :L],
                preferred_element_type=f32) + s_ref[pl.ds(R_BT1, 1), :L]
    h = h * jax.nn.sigmoid(h)                                       # SiLU
    c = jnp.dot(h, w_ref[pl.ds(R_WT2, L), :L],
                preferred_element_type=f32) + s_ref[pl.ds(R_BT2, 1), :L]
    c_act = c * jax.nn.sigmoid(c)                                   # SiLU(c), shared by adaLN

    # --- adaLN modulation for ALL layers: one lane-dense (B,L)x(L,NL*6L) matmul
    # chunk order per layer matches PyTorch adaLN_modulation(c).chunk(6, dim=1)
    mods = jnp.dot(c_act, s_ref[pl.ds(R_WADA, L), :],
                   preferred_element_type=f32) + s_ref[pl.ds(R_BADA, 1), :]

    # --- sparse_up_conv: Conv1d(seq_len, 1, 1) = weighted reduce over axis 1 ---
    cond_up = jnp.sum(cond_ref[...] * wsu, axis=1) + bsu            # (B, L)

    # --- align_net: Conv1d(1, 1, 1) == scalar affine ---------------------------
    aligned = noisy_ref[...] * wal + bal                            # (B, E)

    # --- down_dim on cat([cond_up4, noisy], -1): row-split matmul over one
    #     contiguous (L+E, L) weight block (unaligned lane concat avoided).
    x = (jnp.dot(cond_up, w_ref[pl.ds(R_WDD, L), :L], preferred_element_type=f32)
         + jnp.dot(aligned, w_ref[pl.ds(R_WDD + L, E_DIM), :L], preferred_element_type=f32)
         + s_ref[pl.ds(R_BDD, 1), :L])                              # (B, L)

    # --- DiT blocks (adaLN) ----------------------------------------------------
    for l in range(NUM_LAYERS):
        wb = R_LAYER0 + l * LAYER_W_ROWS
        bb = R_BLAYER + l * 4
        mb = l * 6 * L

        shift_msa = mods[:, mb + 0 * L: mb + 1 * L]
        scale_msa = mods[:, mb + 1 * L: mb + 2 * L]
        gate_msa  = mods[:, mb + 2 * L: mb + 3 * L]
        shift_mlp = mods[:, mb + 3 * L: mb + 4 * L]
        scale_mlp = mods[:, mb + 4 * L: mb + 5 * L]
        gate_mlp  = mods[:, mb + 5 * L: mb + 6 * L]

        # norm1 (LayerNorm, no affine) + modulate
        mu = jnp.mean(x, axis=-1, keepdims=True)
        var = jnp.mean((x - mu) ** 2, axis=-1, keepdims=True)
        xm = (x - mu) * jax.lax.rsqrt(var + LN_EPS) * (1.0 + scale_msa) + shift_msa

        # self-attention over a T==1 token sequence: the per-head softmax over a
        # single key is identically 1, so attn(x) == proj(v).  Only the v slice
        # of the qkv weights is packed / DMA'd; q and k are never computed.
        v = jnp.dot(xm, w_ref[pl.ds(wb + O_WV, L), :L],
                    preferred_element_type=f32) + s_ref[pl.ds(bb + 0, 1), :L]
        attn = jnp.dot(v, w_ref[pl.ds(wb + O_WPROJ, L), :L],
                       preferred_element_type=f32) + s_ref[pl.ds(bb + 1, 1), :L]
        x = x + gate_msa * attn

        # norm2 + modulate
        mu2 = jnp.mean(x, axis=-1, keepdims=True)
        var2 = jnp.mean((x - mu2) ** 2, axis=-1, keepdims=True)
        xm2 = (x - mu2) * jax.lax.rsqrt(var2 + LN_EPS) * (1.0 + scale_mlp) + shift_mlp

        # MLP: Linear(L, 4L) -> GELU(tanh approx) -> Linear(4L, L)
        hh = jnp.dot(xm2, w_ref[pl.ds(wb + O_WFC1, L), :MLP_HIDDEN],
                     preferred_element_type=f32) + s_ref[pl.ds(bb + 2, 1), :MLP_HIDDEN]
        hh = jax.nn.gelu(hh, approximate=True)
        mlp_out = jnp.dot(hh, w_ref[pl.ds(wb + O_WFC2, MLP_HIDDEN), :L],
                          preferred_element_type=f32) + s_ref[pl.ds(bb + 3, 1), :L]
        x = x + gate_mlp * mlp_out

    # --- last: Linear(latent_dim, e_dim), stored as a 128-lane-dense block -----
    # (columns e_dim..128 of wlast / blast are zero; wrapper slices them off.)
    out_ref[...] = jnp.dot(x, w_ref[pl.ds(R_WLAST, L), :],
                           preferred_element_type=f32) + s_ref[pl.ds(R_BLAST, 1), :W_COLS]


def timestep_embedding(t, dim, max_period=10000.0):
    """Sinusoidal timestep embedding (glue), matching DiT's TimestepEmbedder."""
    half = dim // 2
    freqs = jnp.exp(-jnp.log(jnp.float32(max_period))
                    * jnp.arange(half, dtype=jnp.float32) / half)
    args = t.astype(jnp.float32)[:, None] * freqs[None, :]
    return jnp.concatenate([jnp.cos(args), jnp.sin(args)], axis=-1)


def make_params(key):
    """Synthetic params (normal, std=0.02) in math layout (in_features, out_features).
    NOTE: real PyTorch checkpoints store Linear weights as (out, in) and qkv as
    stacked [q;k;v] rows -- transpose / take the v rows before packing."""
    keys = iter(jax.random.split(key, 32))
    L, E, NL, H = LATENT_DIM, E_DIM, NUM_LAYERS, MLP_HIDDEN

    def n(shape):
        return 0.02 * jax.random.normal(next(keys), shape, jnp.float32)

    return dict(
        wt1=n((FREQ_DIM, L)), bt1=n((L,)),
        wt2=n((L, L)), bt2=n((L,)),
        wsu=n((SEQ_LEN,)), bsu=n(()),
        wal=n(()), bal=n(()),
        wdd=n((L + E, L)), bdd=n((L,)),
        wada=n((NL, L, 6 * L)), bada=n((NL, 6 * L)),   # adaLN Linear(L, 6L) per layer
        wv=n((NL, L, L)), bv=n((NL, L)),               # only the v slice of qkv
        wproj=n((NL, L, L)), bproj=n((NL, L)),
        wfc1=n((NL, L, H)), bfc1=n((NL, H)),
        wfc2=n((NL, H, L)), bfc2=n((NL, L)),
        wlast=n((L, E)), blast=n((E,)),
    )


def pack_params(p):
    """Pack all Denoiser parameters into two lane-dense f32 slabs (one DMA each)."""
    L, E, NL, H = LATENT_DIM, E_DIM, NUM_LAYERS, MLP_HIDDEN

    W = jnp.zeros((W_ROWS, W_COLS), jnp.float32)
    W = W.at[R_WT1:R_WT1 + FREQ_DIM, :L].set(p["wt1"])
    W = W.at[R_WT2:R_WT2 + L, :L].set(p["wt2"])
    W = W.at[R_WDD:R_WDD + L + E, :L].set(p["wdd"])
    for l in range(NL):
        wb = R_LAYER0 + l * LAYER_W_ROWS
        W = W.at[wb + O_WV: wb + O_WV + L, :L].set(p["wv"][l])
        W = W.at[wb + O_WPROJ: wb + O_WPROJ + L, :L].set(p["wproj"][l])
        W = W.at[wb + O_WFC1: wb + O_WFC1 + L, :H].set(p["wfc1"][l])
        W = W.at[wb + O_WFC2: wb + O_WFC2 + H, :L].set(p["wfc2"][l])
    W = W.at[R_WLAST:R_WLAST + L, :E].set(p["wlast"])

    S = jnp.zeros((S_ROWS, S_COLS), jnp.float32)
    for l in range(NL):
        S = S.at[R_WADA:R_WADA + L, l * 6 * L:(l + 1) * 6 * L].set(p["wada"][l])
        S = S.at[R_BADA, l * 6 * L:(l + 1) * 6 * L].set(p["bada"][l])
        bb = R_BLAYER + l * 4
        S = S.at[bb + 0, :L].set(p["bv"][l])
        S = S.at[bb + 1, :L].set(p["bproj"][l])
        S = S.at[bb + 2, :H].set(p["bfc1"][l])
        S = S.at[bb + 3, :L].set(p["bfc2"][l])
    S = S.at[R_BT1, :L].set(p["bt1"])
    S = S.at[R_BT2, :L].set(p["bt2"])
    S = S.at[R_BDD, :L].set(p["bdd"])
    S = S.at[R_BLAST, :E].set(p["blast"])
    S = S.at[R_MISC, 0].set(p["bsu"])
    S = S.at[R_MISC, 1].set(p["wal"])
    S = S.at[R_MISC, 2].set(p["bal"])
    S = S.at[R_WSU:R_WSU + SEQ_LEN, 0].set(p["wsu"])
    return {"w128": W, "s_wide": S}


def denoiser_forward(packed, noisy_latents, timesteps, cond, batch_tile=256):
    """noisy_latents: (B, 1, e_dim), timesteps: (B,), cond: (B, seq_len, latent_dim)."""
    B = cond.shape[0]
    tfreq = timestep_embedding(timesteps, FREQ_DIM)                   # glue
    noisy2d = noisy_latents.reshape(B, E_DIM).astype(jnp.float32)     # glue (squeeze T=1)
    cond32 = cond.astype(jnp.float32)

    bt = min(batch_tile, B)
    nb = pl.cdiv(B, bt)
    Bp = nb * bt
    if Bp != B:   # pad batch so it tiles evenly; padded rows are sliced off below
        cond32 = jnp.pad(cond32, ((0, Bp - B), (0, 0), (0, 0)))
        noisy2d = jnp.pad(noisy2d, ((0, Bp - B), (0, 0)))
        tfreq = jnp.pad(tfreq, ((0, Bp - B), (0, 0)))

    w128, s_wide = packed["w128"], packed["s_wide"]

    out = pl.pallas_call(
        _denoiser_kernel,
        out_shape=jax.ShapeDtypeStruct((Bp, W_COLS), jnp.float32),
        grid=(nb,),
        in_specs=[
            pl.BlockSpec((bt, SEQ_LEN, LATENT_DIM), lambda i: (i, 0, 0)),
            pl.BlockSpec((bt, E_DIM), lambda i: (i, 0)),
            pl.BlockSpec((bt, FREQ_DIM), lambda i: (i, 0)),
            pl.BlockSpec(w128.shape, lambda i: (0, 0)),     # weights resident across steps
            pl.BlockSpec(s_wide.shape, lambda i: (0, 0)),   # weights resident across steps
        ],
        out_specs=pl.BlockSpec((bt, W_COLS), lambda i: (i, 0)),
        compiler_params=pltpu.CompilerParams(dimension_semantics=("parallel",)),
    )(cond32, noisy2d, tfreq, w128, s_wide)

    return out[:B, :E_DIM].reshape(B, 1, E_DIM)   # match PyTorch output (B, 1, e_dim)


if __name__ == "__main__":
    key = jax.random.PRNGKey(0)
    pkey, k1, k2, k3 = jax.random.split(key, 4)

    params = make_params(pkey)
    packed = pack_params(params)

    bs = 2
    cond = jax.random.normal(k1, (bs, SEQ_LEN, LATENT_DIM), jnp.float32)
    noisy_latents = jax.random.normal(k2, (bs, 1, E_DIM), jnp.float32)
    timesteps = jax.random.randint(k3, (bs,), 0, 1000)

    out = denoiser_forward(packed, noisy_latents, timesteps, cond)
    jax.block_until_ready(out)
    assert out.shape == (bs, 1, E_DIM) and out.dtype == jnp.float32
    print("KERNEL_OK")
</pallas_src>

<mosaic_0001>
module attributes {stable_mosaic.version = 11 : i64} {
  func.func @_denoiser_kernel(%arg0: i32, %arg1: memref<2x8x32xf32, #tpu.memory_space<vmem>>, %arg2: memref<2x16xf32, #tpu.memory_space<vmem>>, %arg3: memref<2x256xf32, #tpu.memory_space<vmem>>, %arg4: memref<816x128xf32, #tpu.memory_space<vmem>>, %arg5: memref<56x384xf32, #tpu.memory_space<vmem>>, %arg6: memref<2x128xf32, #tpu.memory_space<vmem>>) attributes {dimension_semantics = [#tpu.dimension_semantics<parallel>], iteration_bounds = array<i64: 1>, scalar_prefetch = 0 : i64, scratch_operands = 0 : i64, tpu.core_type = #tpu.core_type<tc>, window_params = [{transform_indices = @transform_0, window_bounds = array<i64: 2, 8, 32>}, {transform_indices = @transform_1, window_bounds = array<i64: 2, 16>}, {transform_indices = @transform_2, window_bounds = array<i64: 2, 256>}, {pipeline_mode = #tpu.pipeline_mode<synchronous>, transform_indices = @transform_3, window_bounds = array<i64: 816, 128>}, {pipeline_mode = #tpu.pipeline_mode<synchronous>, transform_indices = @transform_4, window_bounds = array<i64: 56, 384>}, {transform_indices = @transform_5, window_bounds = array<i64: 2, 128>}]} {
    %c48 = arith.constant 48 : index
    %c0 = arith.constant 0 : index
    %0 = vector.load %arg5[%c48, %c0] : memref<56x384xf32, #tpu.memory_space<vmem>>, vector<8x1xf32>
    %1 = vector.shape_cast %0 : vector<8x1xf32> to vector<1x8x1xf32>
    %c37 = arith.constant 37 : index
    %c0_0 = arith.constant 0 : index
    %2 = vector.load %arg5[%c37, %c0_0] : memref<56x384xf32, #tpu.memory_space<vmem>>, vector<1x1xf32>
    %c37_1 = arith.constant 37 : index
    %c1 = arith.constant 1 : index
    %3 = vector.load %arg5[%c37_1, %c1] : memref<56x384xf32, #tpu.memory_space<vmem>>, vector<1x1xf32>
    %c37_2 = arith.constant 37 : index
    %c2 = arith.constant 2 : index
    %4 = vector.load %arg5[%c37_2, %c2] : memref<56x384xf32, #tpu.memory_space<vmem>>, vector<1x1xf32>
    %c0_3 = arith.constant 0 : index
    %c0_4 = arith.constant 0 : index
    %5 = vector.load %arg3[%c0_3, %c0_4] : memref<2x256xf32, #tpu.memory_space<vmem>>, vector<2x256xf32>
    %c0_5 = arith.constant 0 : index
    %c0_6 = arith.constant 0 : index
    %6 = vector.load %arg4[%c0_5, %c0_6] : memref<816x128xf32, #tpu.memory_space<vmem>>, vector<256x32xf32>
    %cst = arith.constant dense<0.000000e+00> : vector<2x32xf32>
    %7 = tpu.matmul %5, %6, %cst {dimension_numbers = #tpu.dot_dimension_numbers<[1], [0], [0], [1], [0, 0, 1, 1], [], []>} : vector<2x256xf32>, vector<256x32xf32>, vector<2x32xf32> -> vector<2x32xf32>
    %c33 = arith.constant 33 : index
    %c0_7 = arith.constant 0 : index
    %8 = vector.load %arg5[%c33, %c0_7] : memref<56x384xf32, #tpu.memory_space<vmem>>, vector<1x32xf32>
    %9 = vector.broadcast %8 : vector<1x32xf32> to vector<2x32xf32>
    %10 = arith.addf %7, %9 : vector<2x32xf32>
    %11 = arith.negf %10 : vector<2x32xf32>
    %12 = math.exp %11 : vector<2x32xf32>
    %cst_8 = arith.constant 1.000000e+00 : f32
    %13 = vector.broadcast %cst_8 : f32 to vector<2x32xf32>
    %14 = arith.addf %13, %12 : vector<2x32xf32>
    %15 = arith.divf %13, %14 : vector<2x32xf32>
    %16 = arith.mulf %10, %15 : vector<2x32xf32>
    %c256 = arith.constant 256 : index
    %c0_9 = arith.constant 0 : index
    %17 = vector.load %arg4[%c256, %c0_9] : memref<816x128xf32, #tpu.memory_space<vmem>>, vector<32x32xf32>
    %cst_10 = arith.constant dense<0.000000e+00> : vector<2x32xf32>
    %18 = tpu.matmul %16, %17, %cst_10 {dimension_numbers = #tpu.dot_dimension_numbers<[1], [0], [0], [1], [0, 0, 1, 1], [], []>} : vector<2x32xf32>, vector<32x32xf32>, vector<2x32xf32> -> vector<2x32xf32>
    %c34 = arith.constant 34 : index
    %c0_11 = arith.constant 0 : index
    %19 = vector.load %arg5[%c34, %c0_11] : memref<56x384xf32, #tpu.memory_space<vmem>>, vector<1x32xf32>
    %20 = vector.broadcast %19 : vector<1x32xf32> to vector<2x32xf32>
    %21 = arith.addf %18, %20 : vector<2x32xf32>
    %22 = arith.negf %21 : vector<2x32xf32>
    %23 = math.exp %22 : vector<2x32xf32>
    %cst_12 = arith.constant 1.000000e+00 : f32
    %24 = vector.broadcast %cst_12 : f32 to vector<2x32xf32>
    %25 = arith.addf %24, %23 : vector<2x32xf32>
    %26 = arith.divf %24, %25 : vector<2x32xf32>
    %27 = arith.mulf %21, %26 : vector<2x32xf32>
    %c0_13 = arith.constant 0 : index
    %c0_14 = arith.constant 0 : index
    %28 = vector.load %arg5[%c0_13, %c0_14] : memref<56x384xf32, #tpu.memory_space<vmem>>, vector<32x384xf32>
    %cst_15 = arith.constant dense<0.000000e+00> : vector<2x384xf32>
    %29 = tpu.matmul %27, %28, %cst_15 {dimension_numbers = #tpu.dot_dimension_numbers<[1], [0], [0], [1], [0, 0, 1, 1], [], []>} : vector<2x32xf32>, vector<32x384xf32>, vector<2x384xf32> -> vector<2x384xf32>
    %c32 = arith.constant 32 : index
    %c0_16 = arith.constant 0 : index
    %30 = vector.load %arg5[%c32, %c0_16] : memref<56x384xf32, #tpu.memory_space<vmem>>, vector<1x384xf32>
    %31 = vector.broadcast %30 : vector<1x384xf32> to vector<2x384xf32>
    %32 = arith.addf %29, %31 : vector<2x384xf32>
    %c0_17 = arith.constant 0 : index
    %c0_18 = arith.constant 0 : index
    %c0_19 = arith.constant 0 : index
    %33 = vector.load %arg1[%c0_17, %c0_18, %c0_19] : memref<2x8x32xf32, #tpu.memory_space<vmem>>, vector<2x8x32xf32>
    %34 = vector.broadcast %1 : vector<1x8x1xf32> to vector<2x8x32xf32>
    %35 = arith.mulf %33, %34 : vector<2x8x32xf32>
    %cst_20 = arith.constant dense<0.000000e+00> : vector<2x32xf32>
    %36 = vector.multi_reduction <add>, %35, %cst_20 [1] : vector<2x8x32xf32> to vector<2x32xf32>
    %37 = vector.broadcast %2 : vector<1x1xf32> to vector<2x32xf32>
    %38 = arith.addf %36, %37 : vector<2x32xf32>
    %c0_21 = arith.constant 0 : index
    %c0_22 = arith.constant 0 : index
    %39 = vector.load %arg2[%c0_21, %c0_22] : memref<2x16xf32, #tpu.memory_space<vmem>>, vector<2x16xf32>
    %40 = vector.broadcast %3 : vector<1x1xf32> to vector<2x16xf32>
    %41 = arith.mulf %39, %40 : vector<2x16xf32>
    %42 = vector.broadcast %4 : vector<1x1xf32> to vector<2x16xf32>
    %43 = arith.addf %41, %42 : vector<2x16xf32>
    %c288 = arith.constant 288 : index
    %c0_23 = arith.constant 0 : index
    %44 = vector.load %arg4[%c288, %c0_23] : memref<816x128xf32, #tpu.memory_space<vmem>>, vector<32x32xf32>
    %cst_24 = arith.constant dense<0.000000e+00> : vector<2x32xf32>
    %45 = tpu.matmul %38, %44, %cst_24 {dimension_numbers = #tpu.dot_dimension_numbers<[1], [0], [0], [1], [0, 0, 1, 1], [], []>} : vector<2x32xf32>, vector<32x32xf32>, vector<2x32xf32> -> vector<2x32xf32>
    %c320 = arith.constant 320 : index
    %c0_25 = arith.constant 0 : index
    %46 = vector.load %arg4[%c320, %c0_25] : memref<816x128xf32, #tpu.memory_space<vmem>>, vector<16x32xf32>
    %cst_26 = arith.constant dense<0.000000e+00> : vector<2x32xf32>
    %47 = tpu.matmul %43, %46, %cst_26 {dimension_numbers = #tpu.dot_dimension_numbers<[1], [0], [0], [1], [0, 0, 1, 1], [], []>} : vector<2x16xf32>, vector<16x32xf32>, vector<2x32xf32> -> vector<2x32xf32>
    %48 = arith.addf %45, %47 : vector<2x32xf32>
    %c35 = arith.constant 35 : index
    %c0_27 = arith.constant 0 : index
    %49 = vector.load %arg5[%c35, %c0_27] : memref<56x384xf32, #tpu.memory_space<vmem>>, vector<1x32xf32>
    %50 = vector.broadcast %49 : vector<1x32xf32> to vector<2x32xf32>
    %51 = arith.addf %48, %50 : vector<2x32xf32>
    %52 = vector.extract_strided_slice %32 {offsets = [0, 0], sizes = [2, 32], strides = [1, 1]} : vector<2x384xf32> to vector<2x32xf32>
    %53 = vector.extract_strided_slice %32 {offsets = [0, 32], sizes = [2, 32], strides = [1, 1]} : vector<2x384xf32> to vector<2x32xf32>
    %54 = vector.extract_strided_slice %32 {offsets = [0, 64], sizes = [2, 32], strides = [1, 1]} : vector<2x384xf32> to vector<2x32xf32>
    %55 = vector.extract_strided_slice %32 {offsets = [0, 96], sizes = [2, 32], strides = [1, 1]} : vector<2x384xf32> to vector<2x32xf32>
    %56 = vector.extract_strided_slice %32 {offsets = [0, 128], sizes = [2, 32], strides = [1, 1]} : vector<2x384xf32> to vector<2x32xf32>
    %57 = vector.extract_strided_slice %32 {offsets = [0, 160], sizes = [2, 32], strides = [1, 1]} : vector<2x384xf32> to vector<2x32xf32>
    %cst_28 = arith.constant dense<0.000000e+00> : vector<2xf32>
    %58 = vector.multi_reduction <add>, %51, %cst_28 [1] : vector<2x32xf32> to vector<2xf32>
    %59 = vector.shape_cast %58 : vector<2xf32> to vector<2x1xf32>
    %cst_29 = arith.constant 3.200000e+01 : f32
    %60 = vector.broadcast %cst_29 : f32 to vector<2x1xf32>
    %61 = arith.divf %59, %60 : vector<2x1xf32>
    %62 = vector.broadcast %61 : vector<2x1xf32> to vector<2x32xf32>
    %63 = arith.subf %51, %62 : vector<2x32xf32>
    %64 = arith.mulf %63, %63 : vector<2x32xf32>
    %cst_30 = arith.constant dense<0.000000e+00> : vector<2xf32>
    %65 = vector.multi_reduction <add>, %64, %cst_30 [1] : vector<2x32xf32> to vector<2xf32>
    %66 = vector.shape_cast %65 : vector<2xf32> to vector<2x1xf32>
    %cst_31 = arith.constant 3.200000e+01 : f32
    %67 = vector.broadcast %cst_31 : f32 to vector<2x1xf32>
    %68 = arith.divf %66, %67 : vector<2x1xf32>
    %69 = vector.broadcast %61 : vector<2x1xf32> to vector<2x32xf32>
    %70 = arith.subf %51, %69 : vector<2x32xf32>
    %cst_32 = arith.constant 9.99999997E-7 : f32
    %71 = vector.broadcast %cst_32 : f32 to vector<2x1xf32>
    %72 = arith.addf %68, %71 : vector<2x1xf32>
    %73 = math.rsqrt %72 : vector<2x1xf32>
    %74 = vector.broadcast %73 : vector<2x1xf32> to vector<2x32xf32>
    %75 = arith.mulf %70, %74 : vector<2x32xf32>
    %cst_33 = arith.constant 1.000000e+00 : f32
    %76 = vector.broadcast %cst_33 : f32 to vector<2x32xf32>
    %77 = arith.addf %76, %53 : vector<2x32xf32>
    %78 = arith.mulf %75, %77 : vector<2x32xf32>
    %79 = arith.addf %78, %52 : vector<2x32xf32>
    %c336 = arith.constant 336 : index
    %c0_34 = arith.constant 0 : index
    %80 = vector.load %arg4[%c336, %c0_34] : memref<816x128xf32, #tpu.memory_space<vmem>>, vector<32x32xf32>
    %cst_35 = arith.constant dense<0.000000e+00> : vector<2x32xf32>
    %81 = tpu.matmul %79, %80, %cst_35 {dimension_numbers = #tpu.dot_dimension_numbers<[1], [0], [0], [1], [0, 0, 1, 1], [], []>} : vector<2x32xf32>, vector<32x32xf32>, vector<2x32xf32> -> vector<2x32xf32>
    %c38 = arith.constant 38 : index
    %c0_36 = arith.constant 0 : index
    %82 = vector.load %arg5[%c38, %c0_36] : memref<56x384xf32, #tpu.memory_space<vmem>>, vector<1x32xf32>
    %83 = vector.broadcast %82 : vector<1x32xf32> to vector<2x32xf32>
    %84 = arith.addf %81, %83 : vector<2x32xf32>
    %c368 = arith.constant 368 : index
    %c0_37 = arith.constant 0 : index
    %85 = vector.load %arg4[%c368, %c0_37] : memref<816x128xf32, #tpu.memory_space<vmem>>, vector<32x32xf32>
    %cst_38 = arith.constant dense<0.000000e+00> : vector<2x32xf32>
    %86 = tpu.matmul %84, %85, %cst_38 {dimension_numbers = #tpu.dot_dimension_numbers<[1], [0], [0], [1], [0, 0, 1, 1], [], []>} : vector<2x32xf32>, vector<32x32xf32>, vector<2x32xf32> -> vector<2x32xf32>
    %c39 = arith.constant 39 : index
    %c0_39 = arith.constant 0 : index
    %87 = vector.load %arg5[%c39, %c0_39] : memref<56x384xf32, #tpu.memory_space<vmem>>, vector<1x32xf32>
    %88 = vector.broadcast %87 : vector<1x32xf32> to vector<2x32xf32>
    %89 = arith.addf %86, %88 : vector<2x32xf32>
    %90 = arith.mulf %54, %89 : vector<2x32xf32>
    %91 = arith.addf %51, %90 : vector<2x32xf32>
    %cst_40 = arith.constant dense<0.000000e+00> : vector<2xf32>
    %92 = vector.multi_reduction <add>, %91, %cst_40 [1] : vector<2x32xf32> to vector<2xf32>
    %93 = vector.shape_cast %92 : vector<2xf32> to vector<2x1xf32>
    %cst_41 = arith.constant 3.200000e+01 : f32
    %94 = vector.broadcast %cst_41 : f32 to vector<2x1xf32>
    %95 = arith.divf %93, %94 : vector<2x1xf32>
    %96 = vector.broadcast %95 : vector<2x1xf32> to vector<2x32xf32>
    %97 = arith.subf %91, %96 : vector<2x32xf32>
    %98 = arith.mulf %97, %97 : vector<2x32xf32>
    %cst_42 = arith.constant dense<0.000000e+00> : vector<2xf32>
    %99 = vector.multi_reduction <add>, %98, %cst_42 [1] : vector<2x32xf32> to vector<2xf32>
    %100 = vector.shape_cast %99 : vector<2xf32> to vector<2x1xf32>
    %cst_43 = arith.constant 3.200000e+01 : f32
    %101 = vector.broadcast %cst_43 : f32 to vector<2x1xf32>
    %102 = arith.divf %100, %101 : vector<2x1xf32>
    %103 = vector.broadcast %95 : vector<2x1xf32> to vector<2x32xf32>
    %104 = arith.subf %91, %103 : vector<2x32xf32>
    %cst_44 = arith.constant 9.99999997E-7 : f32
    %105 = vector.broadcast %cst_44 : f32 to vector<2x1xf32>
    %106 = arith.addf %102, %105 : vector<2x1xf32>
    %107 = math.rsqrt %106 : vector<2x1xf32>
    %108 = vector.broadcast %107 : vector<2x1xf32> to vector<2x32xf32>
    %109 = arith.mulf %104, %108 : vector<2x32xf32>
    %cst_45 = arith.constant 1.000000e+00 : f32
    %110 = vector.broadcast %cst_45 : f32 to vector<2x32xf32>
    %111 = arith.addf %110, %56 : vector<2x32xf32>
    %112 = arith.mulf %109, %111 : vector<2x32xf32>
    %113 = arith.addf %112, %55 : vector<2x32xf32>
    %c400 = arith.constant 400 : index
    %c0_46 = arith.constant 0 : index
    %114 = vector.load %arg4[%c400, %c0_46] : memref<816x128xf32, #tpu.memory_space<vmem>>, vector<32x128xf32>
    %cst_47 = arith.constant dense<0.000000e+00> : vector<2x128xf32>
    %115 = tpu.matmul %113, %114, %cst_47 {dimension_numbers = #tpu.dot_dimension_numbers<[1], [0], [0], [1], [0, 0, 1, 1], [], []>} : vector<2x32xf32>, vector<32x128xf32>, vector<2x128xf32> -> vector<2x128xf32>
    %c40 = arith.constant 40 : index
    %c0_48 = arith.constant 0 : index
    %116 = vector.load %arg5[%c40, %c0_48] : memref<56x384xf32, #tpu.memory_space<vmem>>, vector<1x128xf32>
    %117 = vector.broadcast %116 : vector<1x128xf32> to vector<2x128xf32>
    %118 = arith.addf %115, %117 : vector<2x128xf32>
    %119 = arith.mulf %118, %118 : vector<2x128xf32>
    %120 = arith.mulf %118, %119 : vector<2x128xf32>
    %cst_49 = arith.constant 4.471500e-02 : f32
    %121 = vector.broadcast %cst_49 : f32 to vector<2x128xf32>
    %122 = arith.mulf %121, %120 : vector<2x128xf32>
    %123 = arith.addf %118, %122 : vector<2x128xf32>
    %cst_50 = arith.constant 0.797884583 : f32
    %124 = vector.broadcast %cst_50 : f32 to vector<2x128xf32>
    %125 = arith.mulf %124, %123 : vector<2x128xf32>
    %126 = math.tanh %125 : vector<2x128xf32>
    %cst_51 = arith.constant 1.000000e+00 : f32
    %127 = vector.broadcast %cst_51 : f32 to vector<2x128xf32>
    %128 = arith.addf %127, %126 : vector<2x128xf32>
    %cst_52 = arith.constant 5.000000e-01 : f32
    %129 = vector.broadcast %cst_52 : f32 to vector<2x128xf32>
    %130 = arith.mulf %129, %128 : vector<2x128xf32>
    %131 = arith.mulf %118, %130 : vector<2x128xf32>
    %c432 = arith.constant 432 : index
    %c0_53 = arith.constant 0 : index
    %132 = vector.load %arg4[%c432, %c0_53] : memref<816x128xf32, #tpu.memory_space<vmem>>, vector<128x32xf32>
    %cst_54 = arith.constant dense<0.000000e+00> : vector<2x32xf32>
    %133 = tpu.matmul %131, %132, %cst_54 {dimension_numbers = #tpu.dot_dimension_numbers<[1], [0], [0], [1], [0, 0, 1, 1], [], []>} : vector<2x128xf32>, vector<128x32xf32>, vector<2x32xf32> -> vector<2x32xf32>
    %c41 = arith.constant 41 : index
    %c0_55 = arith.constant 0 : index
    %134 = vector.load %arg5[%c41, %c0_55] : memref<56x384xf32, #tpu.memory_space<vmem>>, vector<1x32xf32>
    %135 = vector.broadcast %134 : vector<1x32xf32> to vector<2x32xf32>
    %136 = arith.addf %133, %135 : vector<2x32xf32>
    %137 = arith.mulf %57, %136 : vector<2x32xf32>
    %138 = arith.addf %91, %137 : vector<2x32xf32>
    %139 = vector.extract_strided_slice %32 {offsets = [0, 192], sizes = [2, 32], strides = [1, 1]} : vector<2x384xf32> to vector<2x32xf32>
    %140 = vector.extract_strided_slice %32 {offsets = [0, 224], sizes = [2, 32], strides = [1, 1]} : vector<2x384xf32> to vector<2x32xf32>
    %141 = vector.extract_strided_slice %32 {offsets = [0, 256], sizes = [2, 32], strides = [1, 1]} : vector<2x384xf32> to vector<2x32xf32>
    %142 = vector.extract_strided_slice %32 {offsets = [0, 288], sizes = [2, 32], strides = [1, 1]} : vector<2x384xf32> to vector<2x32xf32>
    %143 = vector.extract_strided_slice %32 {offsets = [0, 320], sizes = [2, 32], strides = [1, 1]} : vector<2x384xf32> to vector<2x32xf32>
    %144 = vector.extract_strided_slice %32 {offsets = [0, 352], sizes = [2, 32], strides = [1, 1]} : vector<2x384xf32> to vector<2x32xf32>
    %cst_56 = arith.constant dense<0.000000e+00> : vector<2xf32>
    %145 = vector.multi_reduction <add>, %138, %cst_56 [1] : vector<2x32xf32> to vector<2xf32>
    %146 = vector.shape_cast %145 : vector<2xf32> to vector<2x1xf32>
    %cst_57 = arith.constant 3.200000e+01 : f32
    %147 = vector.broadcast %cst_57 : f32 to vector<2x1xf32>
    %148 = arith.divf %146, %147 : vector<2x1xf32>
    %149 = vector.broadcast %148 : vector<2x1xf32> to vector<2x32xf32>
    %150 = arith.subf %138, %149 : vector<2x32xf32>
    %151 = arith.mulf %150, %150 : vector<2x32xf32>
    %cst_58 = arith.constant dense<0.000000e+00> : vector<2xf32>
    %152 = vector.multi_reduction <add>, %151, %cst_58 [1] : vector<2x32xf32> to vector<2xf32>
    %153 = vector.shape_cast %152 : vector<2xf32> to vector<2x1xf32>
    %cst_59 = arith.constant 3.200000e+01 : f32
    %154 = vector.broadcast %cst_59 : f32 to vector<2x1xf32>
    %155 = arith.divf %153, %154 : vector<2x1xf32>
    %156 = vector.broadcast %148 : vector<2x1xf32> to vector<2x32xf32>
    %157 = arith.subf %138, %156 : vector<2x32xf32>
    %cst_60 = arith.constant 9.99999997E-7 : f32
    %158 = vector.broadcast %cst_60 : f32 to vector<2x1xf32>
    %159 = arith.addf %155, %158 : vector<2x1xf32>
    %160 = math.rsqrt %159 : vector<2x1xf32>
    %161 = vector.broadcast %160 : vector<2x1xf32> to vector<2x32xf32>
    %162 = arith.mulf %157, %161 : vector<2x32xf32>
    %cst_61 = arith.constant 1.000000e+00 : f32
    %163 = vector.broadcast %cst_61 : f32 to vector<2x32xf32>
    %164 = arith.addf %163, %140 : vector<2x32xf32>
    %165 = arith.mulf %162, %164 : vector<2x32xf32>
    %166 = arith.addf %165, %139 : vector<2x32xf32>
    %c560 = arith.constant 560 : index
    %c0_62 = arith.constant 0 : index
    %167 = vector.load %arg4[%c560, %c0_62] : memref<816x128xf32, #tpu.memory_space<vmem>>, vector<32x32xf32>
    %cst_63 = arith.constant dense<0.000000e+00> : vector<2x32xf32>
    %168 = tpu.matmul %166, %167, %cst_63 {dimension_numbers = #tpu.dot_dimension_numbers<[1], [0], [0], [1], [0, 0, 1, 1], [], []>} : vector<2x32xf32>, vector<32x32xf32>, vector<2x32xf32> -> vector<2x32xf32>
    %c42 = arith.constant 42 : index
    %c0_64 = arith.constant 0 : index
    %169 = vector.load %arg5[%c42, %c0_64] : memref<56x384xf32, #tpu.memory_space<vmem>>, vector<1x32xf32>
    %170 = vector.broadcast %169 : vector<1x32xf32> to vector<2x32xf32>
    %171 = arith.addf %168, %170 : vector<2x32xf32>
    %c592 = arith.constant 592 : index
    %c0_65 = arith.constant 0 : index
    %172 = vector.load %arg4[%c592, %c0_65] : memref<816x128xf32, #tpu.memory_space<vmem>>, vector<32x32xf32>
    %cst_66 = arith.constant dense<0.000000e+00> : vector<2x32xf32>
    %173 = tpu.matmul %171, %172, %cst_66 {dimension_numbers = #tpu.dot_dimension_numbers<[1], [0], [0], [1], [0, 0, 1, 1], [], []>} : vector<2x32xf32>, vector<32x32xf32>, vector<2x32xf32> -> vector<2x32xf32>
    %c43 = arith.constant 43 : index
    %c0_67 = arith.constant 0 : index
    %174 = vector.load %arg5[%c43, %c0_67] : memref<56x384xf32, #tpu.memory_space<vmem>>, vector<1x32xf32>
    %175 = vector.broadcast %174 : vector<1x32xf32> to vector<2x32xf32>
    %176 = arith.addf %173, %175 : vector<2x32xf32>
    %177 = arith.mulf %141, %176 : vector<2x32xf32>
    %178 = arith.addf %138, %177 : vector<2x32xf32>
    %cst_68 = arith.constant dense<0.000000e+00> : vector<2xf32>
    %179 = vector.multi_reduction <add>, %178, %cst_68 [1] : vector<2x32xf32> to vector<2xf32>
    %180 = vector.shape_cast %179 : vector<2xf32> to vector<2x1xf32>
    %cst_69 = arith.constant 3.200000e+01 : f32
    %181 = vector.broadcast %cst_69 : f32 to vector<2x1xf32>
    %182 = arith.divf %180, %181 : vector<2x1xf32>
    %183 = vector.broadcast %182 : vector<2x1xf32> to vector<2x32xf32>
    %184 = arith.subf %178, %183 : vector<2x32xf32>
    %185 = arith.mulf %184, %184 : vector<2x32xf32>
    %cst_70 = arith.constant dense<0.000000e+00> : vector<2xf32>
    %186 = vector.multi_reduction <add>, %185, %cst_70 [1] : vector<2x32xf32> to vector<2xf32>
    %187 = vector.shape_cast %186 : vector<2xf32> to vector<2x1xf32>
    %cst_71 = arith.constant 3.200000e+01 : f32
    %188 = vector.broadcast %cst_71 : f32 to vector<2x1xf32>
    %189 = arith.divf %187, %188 : vector<2x1xf32>
    %190 = vector.broadcast %182 : vector<2x1xf32> to vector<2x32xf32>
    %191 = arith.subf %178, %190 : vector<2x32xf32>
    %cst_72 = arith.constant 9.99999997E-7 : f32
    %192 = vector.broadcast %cst_72 : f32 to vector<2x1xf32>
    %193 = arith.addf %189, %192 : vector<2x1xf32>
    %194 = math.rsqrt %193 : vector<2x1xf32>
    %195 = vector.broadcast %194 : vector<2x1xf32> to vector<2x32xf32>
    %196 = arith.mulf %191, %195 : vector<2x32xf32>
    %cst_73 = arith.constant 1.000000e+00 : f32
    %197 = vector.broadcast %cst_73 : f32 to vector<2x32xf32>
    %198 = arith.addf %197, %143 : vector<2x32xf32>
    %199 = arith.mulf %196, %198 : vector<2x32xf32>
    %200 = arith.addf %199, %142 : vector<2x32xf32>
    %c624 = arith.constant 624 : index
    %c0_74 = arith.constant 0 : index
    %201 = vector.load %arg4[%c624, %c0_74] : memref<816x128xf32, #tpu.memory_space<vmem>>, vector<32x128xf32>
    %cst_75 = arith.constant dense<0.000000e+00> : vector<2x128xf32>
    %202 = tpu.matmul %200, %201, %cst_75 {dimension_numbers = #tpu.dot_dimension_numbers<[1], [0], [0], [1], [0, 0, 1, 1], [], []>} : vector<2x32xf32>, vector<32x128xf32>, vector<2x128xf32> -> vector<2x128xf32>
    %c44 = arith.constant 44 : index
    %c0_76 = arith.constant 0 : index
    %203 = vector.load %arg5[%c44, %c0_76] : memref<56x384xf32, #tpu.memory_space<vmem>>, vector<1x128xf32>
    %204 = vector.broadcast %203 : vector<1x128xf32> to vector<2x128xf32>
    %205 = arith.addf %202, %204 : vector<2x128xf32>
    %206 = arith.mulf %205, %205 : vector<2x128xf32>
    %207 = arith.mulf %205, %206 : vector<2x128xf32>
    %cst_77 = arith.constant 4.471500e-02 : f32
    %208 = vector.broadcast %cst_77 : f32 to vector<2x128xf32>
    %209 = arith.mulf %208, %207 : vector<2x128xf32>
    %210 = arith.addf %205, %209 : vector<2x128xf32>
    %cst_78 = arith.constant 0.797884583 : f32
    %211 = vector.broadcast %cst_78 : f32 to vector<2x128xf32>
    %212 = arith.mulf %211, %210 : vector<2x128xf32>
    %213 = math.tanh %212 : vector<2x128xf32>
    %cst_79 = arith.constant 1.000000e+00 : f32
    %214 = vector.broadcast %cst_79 : f32 to vector<2x128xf32>
    %215 = arith.addf %214, %213 : vector<2x128xf32>
    %cst_80 = arith.constant 5.000000e-01 : f32
    %216 = vector.broadcast %cst_80 : f32 to vector<2x128xf32>
    %217 = arith.mulf %216, %215 : vector<2x128xf32>
    %218 = arith.mulf %205, %217 : vector<2x128xf32>
    %c656 = arith.constant 656 : index
    %c0_81 = arith.constant 0 : index
    %219 = vector.load %arg4[%c656, %c0_81] : memref<816x128xf32, #tpu.memory_space<vmem>>, vector<128x32xf32>
    %cst_82 = arith.constant dense<0.000000e+00> : vector<2x32xf32>
    %220 = tpu.matmul %218, %219, %cst_82 {dimension_numbers = #tpu.dot_dimension_numbers<[1], [0], [0], [1], [0, 0, 1, 1], [], []>} : vector<2x128xf32>, vector<128x32xf32>, vector<2x32xf32> -> vector<2x32xf32>
    %c45 = arith.constant 45 : index
    %c0_83 = arith.constant 0 : index
    %221 = vector.load %arg5[%c45, %c0_83] : memref<56x384xf32, #tpu.memory_space<vmem>>, vector<1x32xf32>
    %222 = vector.broadcast %221 : vector<1x32xf32> to vector<2x32xf32>
    %223 = arith.addf %220, %222 : vector<2x32xf32>
    %224 = arith.mulf %144, %223 : vector<2x32xf32>
    %225 = arith.addf %178, %224 : vector<2x32xf32>
    %c784 = arith.constant 784 : index
    %c0_84 = arith.constant 0 : index
    %226 = vector.load %arg4[%c784, %c0_84] : memref<816x128xf32, #tpu.memory_space<vmem>>, vector<32x128xf32>
    %cst_85 = arith.constant dense<0.000000e+00> : vector<2x128xf32>
    %227 = tpu.matmul %225, %226, %cst_85 {dimension_numbers = #tpu.dot_dimension_numbers<[1], [0], [0], [1], [0, 0, 1, 1], [], []>} : vector<2x32xf32>, vector<32x128xf32>, vector<2x128xf32> -> vector<2x128xf32>
    %c36 = arith.constant 36 : index
    %c0_86 = arith.constant 0 : index
    %228 = vector.load %arg5[%c36, %c0_86] : memref<56x384xf32, #tpu.memory_space<vmem>>, vector<1x128xf32>
    %229 = vector.broadcast %228 : vector<1x128xf32> to vector<2x128xf32>
    %230 = arith.addf %227, %229 : vector<2x128xf32>
    %c0_87 = arith.constant 0 : index
    %c0_88 = arith.constant 0 : index
    %231 = vector.load %arg6[%c0_87, %c0_88] : memref<2x128xf32, #tpu.memory_space<vmem>>, vector<2x128xf32>
    tpu.vector_store %arg6[%c0_87, %c0_88], %230 {strides = array<i32>} : memref<2x128xf32, #tpu.memory_space<vmem>>, vector<2x128xf32>,
    return
  }
  func.func @transform_0(%arg0: i32) -> (i32, i32, i32) {
    %c0_i32 = arith.constant 0 : i32
    %c0_i32_0 = arith.constant 0 : i32
    %c0_i32_1 = arith.constant 0 : i32
    return %arg0, %c0_i32, %c0_i32_0 : i32, i32, i32
  }
  func.func @transform_1(%arg0: i32) -> (i32, i32) {
    %c0_i32 = arith.constant 0 : i32
    %c0_i32_0 = arith.constant 0 : i32
    return %arg0, %c0_i32 : i32, i32
  }
  func.func @transform_2(%arg0: i32) -> (i32, i32) {
    %c0_i32 = arith.constant 0 : i32
    %c0_i32_0 = arith.constant 0 : i32
    return %arg0, %c0_i32 : i32, i32
  }
  func.func @transform_3(%arg0: i32) -> (i32, i32) {
    %c0_i32 = arith.constant 0 : i32
    %c0_i32_0 = arith.constant 0 : i32
    %c0_i32_1 = arith.constant 0 : i32
    return %c0_i32, %c0_i32_0 : i32, i32
  }
  func.func @transform_4(%arg0: i32) -> (i32, i32) {
    %c0_i32 = arith.constant 0 : i32
    %c0_i32_0 = arith.constant 0 : i32
    %c0_i32_1 = arith.constant 0 : i32
    return %c0_i32, %c0_i32_0 : i32, i32
  }
  func.func @transform_5(%arg0: i32) -> (i32, i32) {
    %c0_i32 = arith.constant 0 : i32
    %c0_i32_0 = arith.constant 0 : i32
    return %arg0, %c0_i32 : i32, i32
  }
}

</mosaic_0001>

<bundles_post_ra>
// kernel: tpu_custom_call.1
= control target key start
LH: loop header
LB: loop body
LE: loop exit
PB: predicated region body
PF: predicated region fallthrough
CT: control target
= control target key end

     0   :  { %10 = vsyncpa [#allocation3], 0  ;;  %s1263_s0 = inlined_call_operand.hbm [shape: f32[2,8,32], index: 0, kind: input, shape index: {}]   ;;  %s1264_s1 = inlined_call_operand.hbm [shape: f32[2,16], index: 1, kind: input, shape index: {}]   ;;  %s1265_s2 = inlined_call_operand.hbm [shape: f32[2,256], index: 2, kind: input, shape index: {}]   ;;  %s1266_s3 = inlined_call_operand.hbm [shape: f32[816,128], index: 3, kind: input, shape index: {}]   ;;  %s1267_s4 = inlined_call_operand.hbm [shape: f32[56,384], index: 4, kind: input, shape index: {}]   ;;  %s1268_s5 = inlined_call_operand.hbm [shape: f32[2,128], index: 5, kind: output, shape index: {}]  }
   0x1   :  { %11 = vsyncpa [#allocation6], 0 }
   0x2   :  { %12 = vsyncpa [#allocation9], 0  ;;  %s32_s20 = sshll.u32 %s1264_s1, 4  ;;  %s33_s20 = int_to_ptr.hbm [resolvable:$true] %s32_s20 }
   0x3   :  { %13 = vsyncpa [#allocation4], 0  ;;  %s1111_s21 = smov [#allocation5]   ;;  %s53_s25 = sshll.u32 %s1266_s3, 4  ;;  %s54_s25 = int_to_ptr.hbm [resolvable:$true] %s53_s25 }
   0x4   :  { %s34_s22 = sshll.u32 %s1111_s21, 4  ;;  %s1112_s26 = smov [#allocation8]   ;;  %s35_s22 = int_to_ptr.vmem [resolvable:$true] %s34_s22 }
   0x5   :  { %37 = dma.hbm_to_vmem [thread:$0]  %s33_s20, 32, %s35_s22, [#allocation6]  }
   0x6   :  { %s55_s27 = sshll.u32 %s1112_s26, 4  ;;  %s18_s30 = sshll.u32 %s1263_s0, 4  ;;  %s56_s27 = int_to_ptr.vmem [resolvable:$true] %s55_s27  ;;  %s19_s30 = int_to_ptr.hbm [resolvable:$true] %s18_s30 }
   0x7   :  { %s1113_s1 = smov 128   ;;  %s1114_s6 = smov 8  }
   0x8   :  { %61 = dma.hbm_to_vmem [thread:$0]  %s54_s25, 13056, %s56_s27, [#allocation9], %s1113_s1, %s1113_s1, %s1114_s6  }
   0x9   :  { %s43_s9 = sshll.u32 %s1265_s2, 4  ;;  %s1115_s10 = smov [#allocation2]   ;;  %s44_s9 = int_to_ptr.hbm [resolvable:$true] %s43_s9 }
   0xa   :  { %s20_s11 = sshll.u32 %s1115_s10, 4  ;;  %s1116_s3 = smov [#allocation7]   ;;  %s21_s11 = int_to_ptr.vmem [resolvable:$true] %s20_s11 }
   0xb   :  { %26 = dma.hbm_to_vmem [thread:$0]  %s19_s30, 256, %s21_s11, [#allocation3], %s1113_s1, %s1113_s1, %s1114_s6  }
   0xc   :  { %s45_s12 = sshll.u32 %s1116_s3, 4  ;;  %s66_s0 = sshll.u32 %s1267_s4, 4  ;;  %s46_s12 = int_to_ptr.vmem [resolvable:$true] %s45_s12  ;;  %s67_s0 = int_to_ptr.hbm [resolvable:$true] %s66_s0 }
   0xd   :  { %48 = dma.hbm_to_vmem [thread:$0]  %s44_s9, 64, %s46_s12, [#allocation6]  }
   0xe   :  { %s1117_s15 = smov [#allocation10]   ;;  %s1118_s17 = smov 384  }
   0xf   :  { %s68_s16 = sshll.u32 %s1117_s15, 4  ;;  %s1119_s18 = smov 24   ;;  %s69_s16 = int_to_ptr.vmem [resolvable:$true] %s68_s16 }
  0x10   :  { %74 = dma.hbm_to_vmem [thread:$0]  %s67_s0, 2688, %s69_s16, [#allocation9], %s1118_s17, %s1118_s17, %s1119_s18  }
  0x11   :  { %1103 = dma.done.wait [#allocation3], 256  }
  0x12   :  { %1104 = vsyncadd [#allocation3], 4294967040 }
  0x13   :  { %1105 = dma.done.wait [#allocation6], 96  }
  0x14   :  { %1106 = vsyncadd [#allocation6], 4294967200 }
  0x15   :  { %1107 = dma.done.wait [#allocation9], 15744  }
  0x16   :  { %1108 = vsyncadd [#allocation9], 4294951552  ;;  %v113_v0 = vld [vmem:[#allocation8 + $0x78] sm:$0xff]  ;;  %v112_v1 = vld [vmem:[#allocation8 + $0x70] sm:$0xff]  ;;  %v1120_v46 = vmov 0   ;;  %v1121_v49 = vmov 1  }
  0x17   :  { %v129_v2 = vld [vmem:[#allocation8 + $0xf8] sm:$0xff]  ;;  %137 = vmatpush.msra.mxu0 %v113_v0  ;;  %v128_v3 = vld [vmem:[#allocation8 + $0xf0] sm:$0xff]  ;;  %v111_v4 = vld [vmem:[#allocation8 + $0x68] sm:$0xff]  ;;  %932 = vset.pattern.permute.xlu0 %v1120_v46  ;;  %v1122_v50 = vmov 2   ;;  %vm202_vm4 = vcmask 261120   ;;  %vm377_vm9 = vcmask 130048  }
  0x18   :  { %157 = vmatpush.msra.mxu1 %v129_v2  ;;  %v127_v5 = vld [vmem:[#allocation8 + $0xe8] sm:$0xff]  ;;  %v110_v6 = vld [vmem:[#allocation8 + $0x60] sm:$0xff]  ;;  %v109_v8 = vld [vmem:[#allocation8 + $0x58] sm:$0xff]  ;;  %934 = vset.pattern.permute.xlu1 %v1120_v46  ;;  %vm403_vm10 = vcmask 1041409   ;;  %s1123_s2 = smov 96   ;;  %vm429_vm11 = vcmask 254976  }
  0x19   :  { %138 = vmatpush.msra.mxu0 %v112_v1  ;;  %v126_v7 = vld [vmem:[#allocation8 + $0xe0] sm:$0xff]  ;;  %v125_v9 = vld [vmem:[#allocation8 + $0xd8] sm:$0xff]  ;;  %v108_v10 = vld [vmem:[#allocation8 + $0x50] sm:$0xff]  ;;  %s1125_s4 = smov 64   ;;  %s1126_s19 = smov 32  }
  0x1a   :  { %158 = vmatpush.msra.mxu1 %v128_v3  ;;  %v124_v11 = vld [vmem:[#allocation8 + $0xd0] sm:$0xff]  ;;  %v107_v12 = vld [vmem:[#allocation8 + $0x48] sm:$0xff]  ;;  %v97_v14 = vld [vmem:[#allocation7] sm:$0xf]  ;;  %s1127_s20 = smov [#allocation11]   ;;  %s888_s24 = sshll.u32 %s1268_s5, 4  ;;  %s889_s24 = int_to_ptr.hbm [resolvable:$true] %s888_s24 }
  0x1b   :  { %139 = vmatpush.msra.mxu0 %v111_v4  ;;  %v123_v13 = vld [vmem:[#allocation8 + $0xc8] sm:$0xff]  ;;  %132 = vst [vmem:[#allocation1] ss:$4 sm:$0xff] %v97_v14  ;;  %v106_v15 = vld [vmem:[#allocation8 + $0x40] sm:$0xff]  ;;  %v105_v17 = vld [vmem:[#allocation8 + $0x38] sm:$0xff]  ;;  %s886_s21 = sshll.u32 %s1127_s20, 4  ;;  %s887_s21 = int_to_ptr.vmem [resolvable:$true] %s886_s21 }
  0x1c   :  { %159 = vmatpush.msra.mxu1 %v127_v5  ;;  %v122_v16 = vld [vmem:[#allocation8 + $0xc0] sm:$0xff]  ;;  %v121_v18 = vld [vmem:[#allocation8 + $0xb8] sm:$0xff]  ;;  %v104_v19 = vld [vmem:[#allocation8 + $0x30] sm:$0xff] }
  0x1d   :  { %140 = vmatpush.msra.mxu0 %v110_v6  ;;  %v120_v20 = vld [vmem:[#allocation8 + $0xb0] sm:$0xff]  ;;  %v103_v21 = vld [vmem:[#allocation8 + $0x28] sm:$0xff]  ;;  %v102_v23 = vld [vmem:[#allocation8 + $0x20] sm:$0xff] }
  0x1e   :  { %160 = vmatpush.msra.mxu1 %v126_v7  ;;  %v119_v22 = vld [vmem:[#allocation8 + $0xa8] sm:$0xff]  ;;  %v118_v24 = vld [vmem:[#allocation8 + $0xa0] sm:$0xff]  ;;  %v101_v25 = vld [vmem:[#allocation8 + $0x18] sm:$0xff] }
  0x1f   :  { %141 = vmatpush.msra.mxu0 %v109_v8  ;;  %v117_v26 = vld [vmem:[#allocation8 + $0x98] sm:$0xff]  ;;  %v100_v27 = vld [vmem:[#allocation8 + $0x10] sm:$0xff]  ;;  %v99_v29 = vld [vmem:[#allocation8 + $0x8] sm:$0xff] }
  0x20   :  { %161 = vmatpush.msra.mxu1 %v125_v9  ;;  %v116_v28 = vld [vmem:[#allocation8 + $0x90] sm:$0xff]  ;;  %v115_v30 = vld [vmem:[#allocation8 + $0x88] sm:$0xff]  ;;  %v98_v31 = vld [vmem:[#allocation8] sm:$0xff] }
  0x21   :  { %142 = vmatpush.msra.mxu0 %v108_v10  ;;  %v114_v32 = vld [vmem:[#allocation8 + $0x80] sm:$0xff]  ;;  %v200_v35 = vld [vmem:[#allocation8 + $0x118] sm:$0xff]  ;;  %v199_v36 = vld [vmem:[#allocation8 + $0x110] sm:$0xff] }
  0x22   :  { %162 = vmatpush.msra.mxu1 %v124_v11  ;;  %v133_v33 = vld.sshfl [vmem:[#allocation1] sm:$0xff pattern:$0x73625140]  ;;  %v134_v34 = vld.sshfl [vmem:[#allocation1 + $0x8] sm:$0xff pattern:$0x73625140] }
  0x23   :  { %143 = vmatpush.msra.mxu0 %v107_v12  ;;  %v130_v37 = vld [vmem:[#allocation10 + $0x61] ss:$0 sm:$0xff]  ;;  %v198_v38 = vld [vmem:[#allocation8 + $0x108] sm:$0xff]  ;;  %v197_v42 = vld [vmem:[#allocation8 + $0x100] sm:$0xff] }
  0x24   :  { %163 = vmatpush.msra.mxu1 %v123_v13  ;;  %v95_v44 = vld [vmem:[#allocation10 + $0x90] sm:$0xff]  ;;  %v96_v45 = vld [vmem:[#allocation10 + $0x65] ss:$0 sm:$0xff]  ;;  %v255_v63 = vld [vmem:[#allocation10 + $0x48] sm:$0xff] }
  0x25   :  { %144 = vmatpush.msra.mxu0 %v106_v15  ;;  %334 = vperm.xlu0 %932, %v95_v44   ;;  %v256_v0 = vld [vmem:[#allocation10 + $0x50] sm:$0xff]  ;;  %v253_v2 = vld [vmem:[#allocation10 + $0x38] sm:$0xff]  ;;  %v250_v4 = vld [vmem:[#allocation10 + $0x20] sm:$0xff] }
  0x26   :  { %164 = vmatpush.msra.mxu1 %v122_v16  ;;  %355 = vperm.xlu1 %934, %v96_v45   ;;  %v252_v1 = vld [vmem:[#allocation10 + $0x30] sm:$0xff]  ;;  %v249_v3 = vld [vmem:[#allocation10 + $0x18] sm:$0xff]  ;;  %v201_v5 = vld [vmem:[#allocation10 + $0x62] ss:$0 sm:$0xff] }
  0x27   :  { %145 = vmatpush.msra.mxu0 %v105_v17  ;;  %282 = vmatpush.msra.mxu3 %v255_v63  ;;  %v246_v6 = vld [vmem:[#allocation10] sm:$0xff]  ;;  %v247_v7 = vld [vmem:[#allocation10 + $0x8] sm:$0xff]  ;;  %v257_v10 = vld [vmem:[#allocation10 + $0x58] sm:$0xff] }
  0x28   :  { %165 = vmatpush.msra.mxu1 %v121_v18  ;;  %302 = vmatpush.msra.mxu2 %v256_v0  ;;  %v254_v11 = vld [vmem:[#allocation10 + $0x40] sm:$0xff]  ;;  %v251_v13 = vld [vmem:[#allocation10 + $0x28] sm:$0xff]  ;;  %v248_v14 = vld [vmem:[#allocation10 + $0x10] sm:$0xff] }
  0x29   :  { %146 = vmatpush.msra.mxu0 %v104_v19  ;;  %283 = vmatpush.msra.mxu3 %v252_v1  ;;  %v376_v15 = vld [vmem:[#allocation8 + $0x148] sm:$0xff]  ;;  %v331_v17 = vld [vmem:[#allocation2 + $0x8] sm:$0xff]  ;;  %v375_v19 = vld [vmem:[#allocation8 + $0x140] sm:$0xff] }
  0x2a   :  { %166 = vmatpush.msra.mxu1 %v120_v20  ;;  %303 = vmatpush.msra.mxu2 %v253_v2  ;;  %v330_v16 = vld [vmem:[#allocation2] sm:$0xff]  ;;  %v374_v46 = vld [vmem:[#allocation8 + $0x138] sm:$0xff] }
  0x2b   :  { %147 = vmatpush.msra.mxu0 %v103_v21  ;;  %284 = vmatpush.msra.mxu3 %v249_v3 }
  0x2c   :  { %167 = vmatpush.msra.mxu1 %v119_v22  ;;  %304 = vmatpush.msra.mxu2 %v250_v4 }
  0x2d   :  { %148 = vmatpush.msra.mxu0 %v102_v23  ;;  %933 = vset.pattern.permute.xlu0 %v1121_v49  ;;  %v373_v49 = vld [vmem:[#allocation8 + $0x130] sm:$0xff] }
  0x2e   :  { %168 = vmatpush.msra.mxu1 %v118_v24  ;;  %935 = vset.pattern.permute.xlu1 %v1122_v50 }
  0x2f   :  { %149 = vmatpush.msra.mxu0 %v101_v25  ;;  %362 = vperm.xlu0 %933, %v96_v45  }
  0x30   :  { %169 = vmatpush.msra.mxu1 %v117_v26  ;;  %367 = vperm.xlu1 %935, %v96_v45  }
  0x31   :  { %150 = vmatpush.msra.mxu0 %v100_v27  ;;  %285 = vmatpush.msra.mxu3 %v246_v6 }
  0x32   :  { %170 = vmatpush.msra.mxu1 %v116_v28  ;;  %305 = vmatpush.msra.mxu2 %v247_v7  ;;  %v427_v7 = vld [vmem:[#allocation10 + $0x63] ss:$0 sm:$0xff] }
  0x33   :  { %151 = vmatpush.msra.mxu0 %v99_v29  ;;  %322 = vmatpush.msrb.mxu3 %v257_v10 }
  0x34   :  { %171 = vmatpush.msra.mxu1 %v115_v30  ;;  %395 = vmatpush.msrb.mxu2 %v376_v15 }
  0x35   :  { %152 = vmatpush.msra.mxu0 %v98_v31  ;;  %323 = vmatpush.msrb.mxu3 %v254_v11  ;;  %v1124_v11 = vmov 32.0  }
  0x36   :  { %172 = vmatpush.msra.mxu1 %v114_v32  ;;  %153 = vmatmul.f32.vlgmr.msra.gmra.mxu0 %v133_v33 }
  0x37   :  { %173 = vmatmul.f32.vlgmr.msra.gmra.mxu1 %v134_v34  ;;  %218 = vmatpush.msrb.mxu0 %v200_v35 }
  0x38   :  { %936 = vset.pattern.permute.xlu0 %v1122_v50  ;;  %324 = vmatpush.msrb.mxu3 %v251_v13 }
  0x39   :  { %219 = vmatpush.msrb.mxu0 %v199_v36  ;;  %396 = vmatpush.msrb.mxu2 %v375_v19 }
  0x3a   :  { %325 = vmatpush.msrb.mxu3 %v248_v14 }
  0x3b   :  { %220 = vmatpush.msrb.mxu0 %v198_v38 }
  0x3d   :  { %221 = vmatpush.msrb.mxu0 %v197_v42 }
  0x97   :  { %v335_v18 = vpop.permute.xlu0 %334 }
  0x98   :  { %v337_v22 = vmul.f32 %v335_v18, %v330_v16  ;;  %v338_v23 = vmul.f32 %v335_v18, %v331_v17  ;;  %v356_v34 = vpop.permute.xlu1 %355 }
  0x9a   :  { %v339_v24 = vsel %vm202_vm4, %v337_v22, 0.0  ;;  %v346_v25 = vsel %vm202_vm4, %v338_v23, 0.0  ;;  %v469_v23 = vld [vmem:[#allocation8 + $0x168] sm:$0xff] }
  0x9b   :  { %v340_v27 = vrot.slane %v339_v24, 4  ;;  %v347_v28 = vrot.slane %v346_v25, 4 }
  0x9d   :  { %v341_v32 = vadd.f32 %v340_v27, %v339_v24  ;;  %v348_v33 = vadd.f32 %v347_v28, %v346_v25  ;;  %v468_v24 = vld [vmem:[#allocation8 + $0x160] sm:$0xff]  ;;  %v467_v25 = vld [vmem:[#allocation8 + $0x158] sm:$0xff]  ;;  %v497_v27 = vld [vmem:[#allocation8 + $0x188] sm:$0xff] }
  0x9e   :  { %v496_v28 = vld [vmem:[#allocation8 + $0x180] sm:$0xff] }
  0xa1   :  { %v363_v44 = vpop.permute.xlu0 %362 }
  0xb3   :  { %v154_v39 = vpop.f32.mrf.mxu0 }
  0xb4   :  { %v174_v40 = vpop.f32.mrf.mxu1  ;;  %v155_v41 = vadd.f32 %v154_v39, %v130_v37  ;;  %v342_v39 = vrot.slane %v341_v32, 2 }
  0xb6   :  { %v175_v43 = vadd.f32 %v174_v40, %v155_v41  ;;  %v349_v40 = vrot.slane %v348_v33, 2 }
  0xb8   :  { %v900_v47 = vmul.f32 -1.442695, %v175_v43 }
  0xba   :  { %937 = vpow2.f32 %v900_v47  ;;  %v343_v47 = vadd.f32 %v342_v39, %v341_v32 }
  0xc0   :  { %v938_v48 = vpop.eup %937 }
  0xc1   :  { %v180_v51 = vadd.f32 1.0, %v938_v48  ;;  %v350_v48 = vadd.f32 %v349_v40, %v348_v33 }
  0xc3   :  { %939 = vrcp.f32 %v180_v51  ;;  %v192_v55 = vand.u32 2147483648, %v180_v51  ;;  %v190_v57 = vand.u32 2147483647, %v180_v51  ;;  %vm186_vm1 = vweird.f32 %v180_v51 }
  0xc5   :  { %v193_v59 = vor.u32 1.1754944e-38, %v192_v55  ;;  %vm191_vm3 = vcmp.eq.f32.partialorder %v190_v57, 8.507059e+37 }
  0xc9   :  { %v940_v52 = vpop.eup %939 }
  0xca   :  { %v182_v53 = vmul.f32 %v940_v52, %v180_v51  ;;  %vm187_vm0 = vweird.f32 %v940_v52  ;;  %v368_v51 = vpop.permute.xlu1 %367 }
  0xcb   :  { %vm188_vm2 = vmor %vm186_vm1, %vm187_vm0 }
  0xcc   :  { %v183_v54 = vsub.f32 1.0, %v182_v53  ;;  %v344_v53 = vrot.slane %v343_v47, 1 }
  0xce   :  { %v184_v56 = vmul.f32 %v940_v52, %v183_v54  ;;  %v351_v54 = vrot.slane %v350_v48, 1  ;;  %v345_v57 = vadd.f32 %v344_v53, %v343_v47 }
  0xd0   :  { %v185_v58 = vadd.f32 %v940_v52, %v184_v56  ;;  %v371_v56 = vld [vmem:[#allocation8 + $0x120] sm:$0xff] }
  0xd2   :  { %v189_v60 = vsel %vm188_vm2, %v940_v52, %v185_v58  ;;  %v372_v52 = vld [vmem:[#allocation8 + $0x128] sm:$0xff]  ;;  %v352_v58 = vadd.f32 %v351_v54, %v350_v48  ;;  %v498_v48 = vld [vmem:[#allocation10 + $0x67] ss:$0 sm:$0xff] }
  0xd3   :  { %v194_v61 = vsel %vm191_vm3, %v193_v59, %v189_v60  ;;  %v358_v59 = vadd.f32 %v356_v34, %v345_v57 }
  0xd4   :  { %v196_v62 = vmul.f32 %v194_v61, %v175_v43  ;;  %v360_v43 = vld [vmem:[#allocation5] sm:$0x3]  ;;  %v359_v60 = vadd.f32 %v356_v34, %v352_v58 }
  0xd5   :  { %v365_v50 = vmul.f32 %v363_v44, %v360_v43  ;;  %v494_v44 = vld [vmem:[#allocation8 + $0x170] sm:$0xff] }
  0xd6   :  { %901 = vmatmul.msk.f32.vlgmr.msrb.gmra.mxu0 %vm202_vm4, %v196_v62  ;;  %v404_v61 = vsel %vm403_vm10, %v359_v60, %v358_v59  ;;  %v1180_v62 = vld [vmem:[#allocation10 + $0x60] ss:$8 sm:$0x7] }
  0xd7   :  { %v370_v55 = vadd.f32 %v368_v51, %v365_v50  ;;  %v261_v63 = vperm.slane %v1180_v62, 0 }
 0x153   :  { %v223_v8 = vpop.f32.mrf.mxu0 }
 0x154   :  { %v224_v9 = vadd.f32 %v223_v8, %v201_v5 }
 0x156   :  { %v902_v12 = vmul.f32 -1.442695, %v224_v9 }
 0x158   :  { %941 = vpow2.f32 %v902_v12 }
 0x15e   :  { %v942_v20 = vpop.eup %941 }
 0x15f   :  { %v229_v21 = vadd.f32 1.0, %v942_v20 }
 0x161   :  { %943 = vrcp.f32 %v229_v21  ;;  %v241_v31 = vand.u32 2147483648, %v229_v21  ;;  %v239_v36 = vand.u32 2147483647, %v229_v21  ;;  %vm235_vm6 = vweird.f32 %v229_v21 }
 0x162   :  { %945 = vrcp.f32 %v1124_v11 }
 0x163   :  { %v242_v38 = vor.u32 1.1754944e-38, %v241_v31  ;;  %vm240_vm8 = vcmp.eq.f32.partialorder %v239_v36, 8.507059e+37 }
 0x167   :  { %v944_v26 = vpop.eup %943 }
 0x168   :  { %v231_v29 = vmul.f32 %v944_v26, %v229_v21  ;;  %vm236_vm5 = vweird.f32 %v944_v26  ;;  %v946_v12 = vpop.eup %945 }
 0x169   :  { %vm237_vm7 = vmor %vm235_vm6, %vm236_vm5  ;;  %v434_v13 = vmul.f32 32.0, %v946_v12  ;;  %vm438_vm12 = vweird.f32 %v946_v12 }
 0x16a   :  { %v232_v30 = vsub.f32 1.0, %v231_v29  ;;  %v495_v29 = vld [vmem:[#allocation8 + $0x178] sm:$0xff] }
 0x16b   :  { %v435_v14 = vsub.f32 1.0, %v434_v13 }
 0x16c   :  { %v233_v35 = vmul.f32 %v944_v26, %v232_v30 }
 0x16d   :  { %v436_v15 = vmul.f32 %v946_v12, %v435_v14 }
 0x16e   :  { %v234_v37 = vadd.f32 %v944_v26, %v233_v35 }
 0x16f   :  { %v437_v16 = vadd.f32 %v946_v12, %v436_v15 }
 0x170   :  { %v238_v41 = vsel %vm237_vm7, %v944_v26, %v234_v37  ;;  %v466_v26 = vld [vmem:[#allocation8 + $0x150] sm:$0xff] }
 0x171   :  { %v243_v42 = vsel %vm240_vm8, %v242_v38, %v238_v41  ;;  %v1195_v17 = vsel %vm438_vm12, %v946_v12, %v437_v16 }
 0x172   :  { %v245_v45 = vmul.f32 %v243_v42, %v224_v9 }
 0x174   :  { %903 = vmatmul.msk.f32.vlgmr.msra.gmra.mxu3 %vm202_vm4, %v245_v45  ;;  %904 = vmatmul.msk.f32.vlgmr.msra.gmra.mxu2 %vm202_vm4, %v245_v45 }
 0x175   :  { %419 = vmatpush.msra.mxu3 %v374_v46  ;;  %486 = vmatpush.msra.mxu2 %v469_v23 }
 0x177   :  { %420 = vmatpush.msra.mxu3 %v373_v49  ;;  %487 = vmatpush.msra.mxu2 %v468_v24  ;;  %v610_v24 = vld [vmem:[#allocation8 + $0x210] sm:$0xff] }
 0x179   :  { %421 = vmatpush.msra.mxu3 %v372_v52  ;;  %488 = vmatpush.msra.mxu2 %v467_v25  ;;  %v609_v25 = vld [vmem:[#allocation8 + $0x208] sm:$0xff] }
 0x17b   :  { %422 = vmatpush.msra.mxu3 %v371_v56  ;;  %489 = vmatpush.msra.mxu2 %v466_v26  ;;  %v608_v26 = vld [vmem:[#allocation8 + $0x200] sm:$0xff] }
 0x17c   :  { %905 = vmatmul.msk.f32.vlgmr.msrb.gmra.mxu3 %vm202_vm4, %v245_v45  ;;  %906 = vmatmul.msk.f32.vlgmr.msrb.gmra.mxu2 %vm377_vm9, %v370_v55  ;;  %v470_v45 = vld [vmem:[#allocation10 + $0x66] ss:$0 sm:$0xff] }
 0x17d   :  { %514 = vmatpush.msrb.mxu3 %v497_v27  ;;  %v607_v27 = vld [vmem:[#allocation8 + $0x1f8] sm:$0xff] }
 0x17f   :  { %515 = vmatpush.msrb.mxu3 %v496_v28  ;;  %v606_v28 = vld [vmem:[#allocation8 + $0x1f0] sm:$0xff] }
 0x181   :  { %516 = vmatpush.msrb.mxu3 %v495_v29  ;;  %v605_v29 = vld [vmem:[#allocation8 + $0x1e8] sm:$0xff] }
 0x183   :  { %517 = vmatpush.msrb.mxu3 %v494_v44 }
 0x184   :  { %907 = vmatmul.msk.f32.vlgmr.msra.gmra.mxu3 %vm202_vm4, %v404_v61  ;;  %v262_v61 = vperm.slane %v1180_v62, 1 }
 0x1f7   :  { %v287_v0 = vpop.f32.mrf.mxu3  ;;  %v1187_v3 = vpop.f32.mrf.mxu2 }
 0x1f8   :  { %v1183_v1 = vadd.f32 %v287_v0, %v261_v63  ;;  %v1219_v63 = vadd.f32 %v1187_v3, %v262_v61 }
 0x1fa   :  { %v459_v2 = vadd.f32 1.0, %v1183_v1  ;;  %v554_v0 = vadd.f32 1.0, %v1219_v63 }
 0x1fc   :  { %461 = vrot.lane.b32.xlu1 %v459_v2, %s1123_s2  ;;  %v563_v2 = vld [vmem:[#allocation8 + $0x1a0] sm:$0xff] }
 0x1ff   :  { %v1189_v4 = vpop.f32.mrf.mxu3  ;;  %v398_v5 = vpop.f32.mrf.mxu2 }
 0x207   :  { %v424_v6 = vpop.f32.mrf.mxu3 }
 0x208   :  { %v425_v8 = vadd.f32 %v424_v6, %v398_v5  ;;  %v562_v5 = vld [vmem:[#allocation8 + $0x198] sm:$0xff]  ;;  %v561_v6 = vld [vmem:[#allocation8 + $0x190] sm:$0xff] }
 0x20a   :  { %v1191_v9 = vadd.f32 %v427_v7, %v425_v8  ;;  %v613_v7 = vld [vmem:[#allocation8 + $0x228] sm:$0xff]  ;;  %v612_v8 = vld [vmem:[#allocation8 + $0x220] sm:$0xff] }
 0x20b   :  { %615 = vmatpush.msrb.mxu1 %v613_v7  ;;  %v708_v7 = vld [vmem:[#allocation8 + $0x268] sm:$0xff] }
 0x20c   :  { %v430_v10 = vsel %vm429_vm11, %v1191_v9, 0.0  ;;  %725 = vmatpush.msra.mxu3 %v708_v7  ;;  %v809_v7 = vld [vmem:[#allocation8 + $0x2b0] sm:$0xff] }
 0x20d   :  { %431 = vadd.xlane.f32.xlu2 %v430_v10  ;;  %616 = vmatpush.msrb.mxu1 %v612_v8  ;;  %v707_v8 = vld [vmem:[#allocation8 + $0x260] sm:$0xff] }
 0x20e   :  { %726 = vmatpush.msra.mxu3 %v707_v8  ;;  %v808_v8 = vld [vmem:[#allocation8 + $0x2a8] sm:$0xff] }
 0x26e   :  { %v462_v41 = vpop.permute.xlu1 %461 }
 0x280   :  { %v432_v18 = vpop.xlane.xlu2 %431 }
 0x281   :  { %v440_v19 = vmul.f32 %v1195_v17, %v432_v18 }
 0x283   :  { %v441_v20 = vsub.f32 %v1191_v9, %v440_v19 }
 0x285   :  { %v442_v21 = vmul.f32 %v441_v20, %v441_v20 }
 0x287   :  { %v443_v22 = vsel %vm429_vm11, %v442_v21, 0.0 }
 0x288   :  { %444 = vadd.xlane.f32.xlu2 %v443_v22 }
 0x2fb   :  { %v445_v30 = vpop.xlane.xlu2 %444 }
 0x2fc   :  { %v446_v31 = vmul.f32 %v445_v30, %v1195_v17  ;;  %v604_v30 = vld [vmem:[#allocation8 + $0x1e0] sm:$0xff] }
 0x2fe   :  { %v447_v32 = vadd.f32 1e-06, %v446_v31  ;;  %v603_v31 = vld [vmem:[#allocation8 + $0x1d8] sm:$0xff] }
 0x300   :  { %947 = vrsqrt.f32 %v447_v32  ;;  %vm454_vm14 = vweird.f32 %v447_v32 }
 0x306   :  { %v948_v33 = vpop.eup %947 }
 0x307   :  { %v449_v34 = vmul.f32 %v948_v33, %v447_v32  ;;  %vm455_vm13 = vweird.f32 %v948_v33  ;;  %v602_v32 = vld [vmem:[#allocation8 + $0x1d0] sm:$0xff] }
 0x308   :  { %vm456_vm15 = vmor %vm454_vm14, %vm455_vm13 }
 0x309   :  { %v450_v35 = vmul.f32 %v948_v33, %v449_v34  ;;  %v600_v34 = vld [vmem:[#allocation8 + $0x1c0] sm:$0xff] }
 0x30b   :  { %v451_v36 = vmul.f32 0.5, %v450_v35  ;;  %v599_v35 = vld [vmem:[#allocation8 + $0x1b8] sm:$0xff] }
 0x30d   :  { %v452_v37 = vsub.f32 1.5, %v451_v36  ;;  %v598_v36 = vld [vmem:[#allocation8 + $0x1b0] sm:$0xff] }
 0x30f   :  { %v453_v38 = vmul.f32 %v948_v33, %v452_v37  ;;  %v565_v37 = vld [vmem:[#allocation10 + $0x78] ss:$0 sm:$0xff] }
 0x311   :  { %v457_v39 = vsel %vm456_vm15, %v948_v33, %v453_v38  ;;  %v601_v33 = vld [vmem:[#allocation8 + $0x1c8] sm:$0xff] }
 0x312   :  { %v458_v40 = vmul.f32 %v457_v39, %v441_v20 }
 0x314   :  { %v464_v42 = vmul.f32 %v462_v41, %v458_v40 }
 0x316   :  { %v465_v43 = vadd.f32 %v464_v42, %v1183_v1 }
 0x318   :  { %908 = vmatmul.msk.f32.vlgmr.msra.gmra.mxu2 %vm202_vm4, %v465_v43 }
 0x39b   :  { %v491_v46 = vpop.f32.mrf.mxu2 }
 0x39c   :  { %v492_v47 = vadd.f32 %v491_v46, %v470_v45 }
 0x39e   :  { %909 = vmatmul.msk.f32.vlgmr.msrb.gmra.mxu3 %vm202_vm4, %v492_v47 }
 0x421   :  { %v519_v49 = vpop.f32.mrf.mxu3 }
 0x422   :  { %v520_v50 = vadd.f32 %v519_v49, %v498_v48  ;;  %v614_v49 = vld [vmem:[#allocation10 + $0x79] ss:$0 sm:$0xff] }
 0x424   :  { %523 = vrot.lane.b32.xlu2 %v520_v50, %s1125_s4 }
 0x42c   :  { %557 = vrot.lane.b32.xlu2 %v1183_v1, %s1126_s19 }
 0x47e   :  { %v524_v51 = vpop.permute.xlu2 %523 }
 0x47f   :  { %v526_v52 = vmul.f32 %v524_v51, %v1183_v1  ;;  %v564_v1 = vld [vmem:[#allocation8 + $0x1a8] sm:$0xff] }
 0x480   :  { %581 = vmatpush.msra.mxu0 %v564_v1 }
 0x481   :  { %528 = vrot.lane.b32.xlu0 %v526_v52, %s1125_s4 }
 0x482   :  { %582 = vmatpush.msra.mxu0 %v563_v2 }
 0x484   :  { %583 = vmatpush.msra.mxu0 %v562_v5  ;;  %v678_v5 = vld [vmem:[#allocation8 + $0x238] sm:$0xff] }
 0x486   :  { %584 = vmatpush.msra.mxu0 %v561_v6  ;;  %v558_v22 = vpop.permute.xlu2 %557  ;;  %v677_v6 = vld [vmem:[#allocation8 + $0x230] sm:$0xff] }
 0x4f3   :  { %v529_v53 = vpop.permute.xlu0 %528 }
 0x4f4   :  { %v1210_v54 = vadd.f32 %v529_v53, %v1191_v9  ;;  %v611_v9 = vld [vmem:[#allocation8 + $0x218] sm:$0xff] }
 0x4f5   :  { %617 = vmatpush.msrb.mxu1 %v611_v9  ;;  %v706_v9 = vld [vmem:[#allocation8 + $0x258] sm:$0xff] }
 0x4f6   :  { %v532_v55 = vsel %vm429_vm11, %v1210_v54, 0.0  ;;  %727 = vmatpush.msra.mxu3 %v706_v9  ;;  %v807_v9 = vld [vmem:[#allocation8 + $0x2a0] sm:$0xff] }
 0x4f7   :  { %533 = vadd.xlane.f32.xlu1 %v532_v55  ;;  %618 = vmatpush.msrb.mxu1 %v610_v24  ;;  %v705_v24 = vld [vmem:[#allocation8 + $0x250] sm:$0xff] }
 0x4f8   :  { %728 = vmatpush.msra.mxu3 %v705_v24 }
 0x4f9   :  { %619 = vmatpush.msrb.mxu1 %v609_v25  ;;  %v681_v25 = vld [vmem:[#allocation10 + $0x7a] ss:$0 sm:$0xff] }
 0x4fb   :  { %620 = vmatpush.msrb.mxu1 %v608_v26 }
 0x4fd   :  { %621 = vmatpush.msrb.mxu1 %v607_v27 }
 0x4ff   :  { %622 = vmatpush.msrb.mxu1 %v606_v28  ;;  %v709_v28 = vld [vmem:[#allocation10 + $0x7b] ss:$0 sm:$0xff] }
 0x501   :  { %623 = vmatpush.msrb.mxu1 %v605_v29 }
 0x503   :  { %624 = vmatpush.msrb.mxu1 %v604_v30 }
 0x505   :  { %625 = vmatpush.msrb.mxu1 %v603_v31 }
 0x507   :  { %626 = vmatpush.msrb.mxu1 %v602_v32 }
 0x509   :  { %627 = vmatpush.msrb.mxu1 %v601_v33 }
 0x50b   :  { %628 = vmatpush.msrb.mxu1 %v600_v34 }
 0x50d   :  { %629 = vmatpush.msrb.mxu1 %v599_v35 }
 0x50f   :  { %630 = vmatpush.msrb.mxu1 %v598_v36 }
 0x56a   :  { %v534_v56 = vpop.xlane.xlu1 %533 }
 0x56b   :  { %v535_v57 = vmul.f32 %v534_v56, %v1195_v17 }
 0x56d   :  { %v536_v58 = vsub.f32 %v1210_v54, %v535_v57 }
 0x56f   :  { %v537_v59 = vmul.f32 %v536_v58, %v536_v58 }
 0x571   :  { %v538_v60 = vsel %vm429_vm11, %v537_v59, 0.0 }
 0x572   :  { %539 = vadd.xlane.f32.xlu0 %v538_v60 }
 0x586   :  { %668 = vrot.lane.b32.xlu0 %v554_v0, %s1126_s19 }
 0x5e5   :  { %v540_v10 = vpop.xlane.xlu0 %539 }
 0x5e6   :  { %v541_v3 = vmul.f32 %v540_v10, %v1195_v17 }
 0x5e8   :  { %v542_v11 = vadd.f32 1e-06, %v541_v3 }
 0x5ea   :  { %949 = vrsqrt.f32 %v542_v11  ;;  %vm549_vm1 = vweird.f32 %v542_v11 }
 0x5f0   :  { %v950_v12 = vpop.eup %949 }
 0x5f1   :  { %v544_v13 = vmul.f32 %v950_v12, %v542_v11  ;;  %vm550_vm0 = vweird.f32 %v950_v12 }
 0x5f2   :  { %vm551_vm2 = vmor %vm549_vm1, %vm550_vm0 }
 0x5f3   :  { %v545_v14 = vmul.f32 %v950_v12, %v544_v13 }
 0x5f5   :  { %v546_v15 = vmul.f32 0.5, %v545_v14 }
 0x5f7   :  { %v547_v16 = vsub.f32 1.5, %v546_v15 }
 0x5f9   :  { %v548_v18 = vmul.f32 %v950_v12, %v547_v16 }
 0x5fb   :  { %v552_v19 = vsel %vm551_vm2, %v950_v12, %v548_v18 }
 0x5fc   :  { %v553_v20 = vmul.f32 %v552_v19, %v536_v58  ;;  %v263_v58 = vperm.slane %v1180_v62, 2  ;;  %v680_v62 = vld [vmem:[#allocation8 + $0x248] sm:$0xff] }
 0x5fd   :  { %697 = vmatpush.msrb.mxu2 %v680_v62  ;;  %v813_v62 = vld [vmem:[#allocation8 + $0x2d0] sm:$0xff] }
 0x5fe   :  { %v555_v21 = vmul.f32 %v554_v0, %v553_v20  ;;  %v1232_v59 = vadd.f32 %v1189_v4, %v263_v58  ;;  %v679_v4 = vld [vmem:[#allocation8 + $0x240] sm:$0xff]  ;;  %v669_v20 = vpop.permute.xlu0 %668 }
 0x5ff   :  { %698 = vmatpush.msrb.mxu2 %v679_v4  ;;  %v812_v4 = vld [vmem:[#allocation8 + $0x2c8] sm:$0xff] }
 0x600   :  { %v560_v23 = vadd.f32 %v558_v22, %v555_v21  ;;  %v757_v60 = vadd.f32 1.0, %v1232_v59 }
 0x601   :  { %699 = vmatpush.msrb.mxu2 %v678_v5  ;;  %v811_v5 = vld [vmem:[#allocation8 + $0x2c0] sm:$0xff] }
 0x602   :  { %910 = vmatmul.msk.f32.vlgmr.msra.gmra.mxu0 %vm202_vm4, %v560_v23 }
 0x603   :  { %700 = vmatpush.msrb.mxu2 %v677_v6  ;;  %v810_v6 = vld [vmem:[#allocation8 + $0x2b8] sm:$0xff] }
 0x67f   :  { %v586_v38 = vpop.f32.mrf.mxu0 }
 0x680   :  { %v587_v39 = vadd.f32 %v586_v38, %v565_v37 }
 0x682   :  { %v589_v40 = vmul.f32 %v587_v39, %v587_v39 }
 0x684   :  { %v590_v41 = vmul.f32 %v589_v40, %v587_v39  ;;  %v770_v40 = vld [vmem:[#allocation8 + $0x280] sm:$0xff] }
 0x686   :  { %v591_v42 = vmul.f32 0.044715, %v590_v41  ;;  %v769_v41 = vld [vmem:[#allocation8 + $0x278] sm:$0xff] }
 0x688   :  { %v592_v43 = vadd.f32 %v591_v42, %v587_v39  ;;  %v768_v42 = vld [vmem:[#allocation8 + $0x270] sm:$0xff] }
 0x68a   :  { %v593_v44 = vmul.f32 0.7978846, %v592_v43  ;;  %v820_v43 = vld [vmem:[#allocation8 + $0x308] sm:$0xff] }
 0x68b   :  { %822 = vmatpush.msra.mxu2 %v820_v43 }
 0x68c   :  { %951 = vtanh.f32 %v593_v44  ;;  %v819_v44 = vld [vmem:[#allocation8 + $0x300] sm:$0xff] }
 0x68d   :  { %823 = vmatpush.msra.mxu2 %v819_v44 }
 0x692   :  { %v952_v45 = vpop.eup %951 }
 0x693   :  { %v595_v46 = vadd.f32 1.0, %v952_v45  ;;  %v818_v45 = vld [vmem:[#allocation8 + $0x2f8] sm:$0xff] }
 0x694   :  { %824 = vmatpush.msra.mxu2 %v818_v45 }
 0x695   :  { %v596_v47 = vmul.f32 0.5, %v595_v46 }
 0x697   :  { %v597_v48 = vmul.f32 %v596_v47, %v587_v39  ;;  %v771_v39 = vld [vmem:[#allocation8 + $0x288] sm:$0xff] }
 0x698   :  { %788 = vmatpush.msrb.mxu0 %v771_v39 }
 0x699   :  { %631 = vmatmul.f32.vlgmr.msrb.gmra.mxu1 %v597_v48 }
 0x69a   :  { %789 = vmatpush.msrb.mxu0 %v770_v40 }
 0x69c   :  { %790 = vmatpush.msrb.mxu0 %v769_v41 }
 0x69e   :  { %791 = vmatpush.msrb.mxu0 %v768_v42 }
 0x716   :  { %v632_v50 = vpop.f32.mrf.mxu1 }
 0x717   :  { %v633_v51 = vadd.f32 %v632_v50, %v614_v49 }
 0x719   :  { %636 = vrot.lane.b32.xlu2 %v633_v51, %s1126_s19 }
 0x773   :  { %v637_v52 = vpop.permute.xlu2 %636 }
 0x774   :  { %v639_v53 = vmul.f32 %v637_v52, %v1219_v63 }
 0x776   :  { %641 = vrot.lane.b32.xlu2 %v639_v53, %s1123_s2 }
 0x7d0   :  { %v642_v55 = vpop.permute.xlu2 %641 }
 0x7d1   :  { %v644_v56 = vadd.f32 %v642_v55, %v1210_v54 }
 0x7d3   :  { %v645_v57 = vsel %vm429_vm11, %v644_v56, 0.0 }
 0x7d4   :  { %646 = vadd.xlane.f32.xlu2 %v645_v57 }
 0x7ec   :  { %759 = vrot.lane.b32.xlu2 %v757_v60, %s1125_s4 }
 0x7f4   :  { %764 = vrot.lane.b32.xlu2 %v1232_v59, %s1123_s2 }
 0x847   :  { %v647_v61 = vpop.xlane.xlu2 %646 }
 0x848   :  { %v648_v0 = vmul.f32 %v647_v61, %v1195_v17 }
 0x84a   :  { %v649_v1 = vsub.f32 %v644_v56, %v648_v0 }
 0x84c   :  { %v650_v54 = vmul.f32 %v649_v1, %v649_v1 }
 0x84e   :  { %v651_v2 = vsel %vm429_vm11, %v650_v54, 0.0  ;;  %v815_v54 = vld [vmem:[#allocation8 + $0x2e0] sm:$0xff] }
 0x84f   :  { %652 = vadd.xlane.f32.xlu1 %v651_v2  ;;  %v760_v52 = vpop.permute.xlu2 %759  ;;  %v814_v2 = vld [vmem:[#allocation8 + $0x2d8] sm:$0xff] }
 0x857   :  { %v765_v61 = vpop.permute.xlu2 %764 }
 0x868   :  { %673 = vrot.lane.b32.xlu1 %v1219_v63, %s1125_s4 }
 0x8c2   :  { %v653_v10 = vpop.xlane.xlu1 %652 }
 0x8c3   :  { %v654_v3 = vmul.f32 %v653_v10, %v1195_v17  ;;  %v806_v10 = vld [vmem:[#allocation8 + $0x298] sm:$0xff] }
 0x8c5   :  { %v655_v11 = vadd.f32 1e-06, %v654_v3  ;;  %v805_v3 = vld [vmem:[#allocation8 + $0x290] sm:$0xff] }
 0x8c7   :  { %953 = vrsqrt.f32 %v655_v11  ;;  %vm662_vm5 = vweird.f32 %v655_v11 }
 0x8cd   :  { %v954_v63 = vpop.eup %953 }
 0x8ce   :  { %v657_v12 = vmul.f32 %v954_v63, %v655_v11  ;;  %vm663_vm3 = vweird.f32 %v954_v63  ;;  %v772_v11 = vld [vmem:[#allocation10 + $0x7c] ss:$0 sm:$0xff] }
 0x8cf   :  { %vm664_vm6 = vmor %vm662_vm5, %vm663_vm3 }
 0x8d0   :  { %v658_v13 = vmul.f32 %v954_v63, %v657_v12 }
 0x8d2   :  { %v659_v14 = vmul.f32 0.5, %v658_v13 }
 0x8d4   :  { %v660_v15 = vsub.f32 1.5, %v659_v14 }
 0x8d6   :  { %v661_v16 = vmul.f32 %v954_v63, %v660_v15 }
 0x8d8   :  { %v665_v18 = vsel %vm664_vm6, %v954_v63, %v661_v16 }
 0x8d9   :  { %v666_v19 = vmul.f32 %v665_v18, %v649_v1  ;;  %v816_v1 = vld [vmem:[#allocation8 + $0x2e8] sm:$0xff] }
 0x8da   :  { %v674_v22 = vpop.permute.xlu1 %673 }
 0x8db   :  { %v671_v21 = vmul.f32 %v669_v20, %v666_v19 }
 0x8dd   :  { %v676_v23 = vadd.f32 %v674_v22, %v671_v21 }
 0x8df   :  { %911 = vmatmul.msk.f32.vlgmr.msrb.gmra.mxu2 %vm202_vm4, %v676_v23  ;;  %v821_v23 = vld [vmem:[#allocation10 + $0x7d] ss:$0 sm:$0xff] }
 0x962   :  { %v702_v26 = vpop.f32.mrf.mxu2 }
 0x963   :  { %v703_v27 = vadd.f32 %v702_v26, %v681_v25  ;;  %v855_v26 = vld [vmem:[#allocation8 + $0x328] sm:$0xff] }
 0x964   :  { %872 = vmatpush.msrb.mxu3 %v855_v26 }
 0x965   :  { %912 = vmatmul.msk.f32.vlgmr.msra.gmra.mxu3 %vm202_vm4, %v703_v27  ;;  %v854_v27 = vld [vmem:[#allocation8 + $0x320] sm:$0xff] }
 0x966   :  { %873 = vmatpush.msrb.mxu3 %v854_v27 }
 0x9e8   :  { %v730_v29 = vpop.f32.mrf.mxu3 }
 0x9e9   :  { %v731_v30 = vadd.f32 %v730_v29, %v709_v28  ;;  %v853_v28 = vld [vmem:[#allocation8 + $0x318] sm:$0xff] }
 0x9ea   :  { %874 = vmatpush.msrb.mxu3 %v853_v28 }
 0x9eb   :  { %v733_v31 = vmul.f32 %v731_v30, %v1232_v59 }
 0x9ed   :  { %v1246_v32 = vadd.f32 %v733_v31, %v644_v56  ;;  %v852_v31 = vld [vmem:[#allocation8 + $0x310] sm:$0xff] }
 0x9ee   :  { %875 = vmatpush.msrb.mxu3 %v852_v31 }
 0x9ef   :  { %v735_v33 = vsel %vm429_vm11, %v1246_v32, 0.0 }
 0x9f0   :  { %736 = vadd.xlane.f32.xlu0 %v735_v33 }
 0xa63   :  { %v737_v34 = vpop.xlane.xlu0 %736 }
 0xa64   :  { %v738_v35 = vmul.f32 %v737_v34, %v1195_v17 }
 0xa66   :  { %v739_v36 = vsub.f32 %v1246_v32, %v738_v35  ;;  %v856_v35 = vld [vmem:[#allocation10 + $0x64] ss:$0 sm:$0xff] }
 0xa68   :  { %v740_v37 = vmul.f32 %v739_v36, %v739_v36 }
 0xa6a   :  { %v741_v38 = vsel %vm429_vm11, %v740_v37, 0.0 }
 0xa6b   :  { %742 = vadd.xlane.f32.xlu1 %v741_v38 }
 0xade   :  { %v743_v46 = vpop.xlane.xlu1 %742 }
 0xadf   :  { %v744_v47 = vmul.f32 %v743_v46, %v1195_v17  ;;  %v817_v17 = vld [vmem:[#allocation8 + $0x2f0] sm:$0xff] }
 0xae0   :  { %825 = vmatpush.msra.mxu2 %v817_v17 }
 0xae1   :  { %v745_v48 = vadd.f32 1e-06, %v744_v47 }
 0xae2   :  { %826 = vmatpush.msra.mxu2 %v816_v1 }
 0xae3   :  { %955 = vrsqrt.f32 %v745_v48  ;;  %vm752_vm8 = vweird.f32 %v745_v48 }
 0xae4   :  { %827 = vmatpush.msra.mxu2 %v815_v54 }
 0xae6   :  { %828 = vmatpush.msra.mxu2 %v814_v2 }
 0xae8   :  { %829 = vmatpush.msra.mxu2 %v813_v62 }
 0xae9   :  { %v956_v49 = vpop.eup %955 }
 0xaea   :  { %v747_v50 = vmul.f32 %v956_v49, %v745_v48  ;;  %vm753_vm7 = vweird.f32 %v956_v49  ;;  %830 = vmatpush.msra.mxu2 %v812_v4 }
 0xaeb   :  { %vm754_vm9 = vmor %vm752_vm8, %vm753_vm7 }
 0xaec   :  { %v748_v51 = vmul.f32 %v956_v49, %v747_v50  ;;  %831 = vmatpush.msra.mxu2 %v811_v5 }
 0xaee   :  { %v749_v53 = vmul.f32 0.5, %v748_v51  ;;  %832 = vmatpush.msra.mxu2 %v810_v6 }
 0xaf0   :  { %v750_v55 = vsub.f32 1.5, %v749_v53  ;;  %833 = vmatpush.msra.mxu2 %v809_v7 }
 0xaf2   :  { %v751_v56 = vmul.f32 %v956_v49, %v750_v55  ;;  %834 = vmatpush.msra.mxu2 %v808_v8 }
 0xaf4   :  { %v755_v57 = vsel %vm754_vm9, %v956_v49, %v751_v56  ;;  %835 = vmatpush.msra.mxu2 %v807_v9 }
 0xaf5   :  { %v756_v58 = vmul.f32 %v755_v57, %v739_v36 }
 0xaf6   :  { %836 = vmatpush.msra.mxu2 %v806_v10 }
 0xaf7   :  { %v762_v60 = vmul.f32 %v760_v52, %v756_v58 }
 0xaf8   :  { %837 = vmatpush.msra.mxu2 %v805_v3 }
 0xaf9   :  { %v767_v0 = vadd.f32 %v765_v61, %v762_v60 }
 0xafb   :  { %913 = vmatmul.msk.f32.vlgmr.msrb.gmra.mxu0 %vm202_vm4, %v767_v0 }
 0xb78   :  { %v793_v63 = vpop.f32.mrf.mxu0 }
 0xb79   :  { %v794_v12 = vadd.f32 %v793_v63, %v772_v11 }
 0xb7b   :  { %v796_v13 = vmul.f32 %v794_v12, %v794_v12 }
 0xb7d   :  { %v797_v14 = vmul.f32 %v796_v13, %v794_v12 }
 0xb7f   :  { %v798_v15 = vmul.f32 0.044715, %v797_v14 }
 0xb81   :  { %v799_v16 = vadd.f32 %v798_v15, %v794_v12 }
 0xb83   :  { %v800_v18 = vmul.f32 0.7978846, %v799_v16 }
 0xb85   :  { %957 = vtanh.f32 %v800_v18 }
 0xb8b   :  { %v958_v19 = vpop.eup %957 }
 0xb8c   :  { %v802_v20 = vadd.f32 1.0, %v958_v19 }
 0xb8e   :  { %v803_v21 = vmul.f32 0.5, %v802_v20 }
 0xb90   :  { %v804_v22 = vmul.f32 %v803_v21, %v794_v12 }
 0xb92   :  { %838 = vmatmul.f32.vlgmr.msra.gmra.mxu2 %v804_v22 }
 0xc15   :  { %v839_v24 = vpop.f32.mrf.mxu2 }
 0xc16   :  { %v840_v25 = vadd.f32 %v839_v24, %v821_v23 }
 0xc18   :  { %843 = vrot.lane.b32.xlu0 %v840_v25, %s1123_s2 }
 0xc8a   :  { %v844_v29 = vpop.permute.xlu0 %843 }
 0xc8b   :  { %v846_v30 = vmul.f32 %v844_v29, %v1232_v59 }
 0xc8d   :  { %848 = vrot.lane.b32.xlu2 %v846_v30, %s1126_s19 }
 0xce7   :  { %v849_v33 = vpop.permute.xlu2 %848 }
 0xce8   :  { %v851_v34 = vadd.f32 %v849_v33, %v1246_v32 }
 0xcea   :  { %914 = vmatmul.msk.f32.vlgmr.msrb.gmra.mxu3 %vm202_vm4, %v851_v34 }
 0xd6d   :  { %v877_v36 = vpop.f32.mrf.mxu3 }
 0xd6e   :  { %v878_v37 = vadd.f32 %v877_v36, %v856_v35 }
 0xd70   :  { %880 = vst [vmem:[#allocation11] sm:$0x3] %v878_v37 }
 0xd71   :  { %891 = dma.vmem_to_hbm [thread:$0]  %s887_s21, 32, %s889_s24, [#allocation4]  }
 0xd72   :  { %1109 = dma.done.wait [#allocation4], 32  }
 0xd73   :  { %1110 = vsyncadd [#allocation4], 4294967264 }
 0xd74   :  { %896 = vsyncpa [#allocation3], 1 }
 0xd75   :  { %897 = vsyncpa [#allocation6], 1 }
 0xd76   :  { %898 = vsyncpa [#allocation9], 1 }
 0xd77   :  { %899 = vsyncpa [#allocation4], 1 }

</bundles_post_ra>
